<compile_context>
chip_gen: v7x
topology: tpu7x:2x2x1
jax: 0.10.0
libtpu: 0.0.40
codegen_flags: <defaults>
</compile_context>

<pallas_src>
import functools
import math

import jax
import jax.numpy as jnp
from jax.experimental import pallas as pl
from jax.experimental.pallas import tpu as pltpu


def _layernorm(x, gamma, beta, eps=1e-5):
    mean = jnp.mean(x, axis=-1, keepdims=True)
    var = jnp.mean((x - mean) ** 2, axis=-1, keepdims=True)
    return (x - mean) * jax.lax.rsqrt(var + eps) * gamma + beta


def transformer_block_kernel(
    x_ref,
    ln1_g_ref, ln1_b_ref,
    wqkv_ref, bqkv_ref,
    wproj_ref, bproj_ref,
    ln2_g_ref, ln2_b_ref,
    w1_ref, b1_ref,
    w2_ref, b2_ref,
    out_ref,
    *, bt, seq, num_heads, head_dim,
):
    D = num_heads * head_dim
    rows = bt * seq

    x = x_ref[...].astype(jnp.float32)                          # (rows, D)

    # ---- LayerNorm 1 (f32 statistics) ----
    h = _layernorm(x, ln1_g_ref[...], ln1_b_ref[...])

    # ---- Fused QKV projection (attention scale pre-folded into Q columns) ----
    qkv = jnp.dot(h.astype(jnp.bfloat16), wqkv_ref[...],
                  preferred_element_type=jnp.float32) + bqkv_ref[...]   # (rows, 3D)

    # ---- Multi-head self-attention, batched over the bt samples of the tile.
    #      Each head's output is contracted straight into the projection so
    #      there is no per-head scratch write / concat.                      ----
    proj_acc = None
    for hi in range(num_heads):
        lo = hi * head_dim
        qh = qkv[:, lo:lo + head_dim].reshape(bt, seq, head_dim).astype(jnp.bfloat16)
        kh = qkv[:, D + lo:D + lo + head_dim].reshape(bt, seq, head_dim).astype(jnp.bfloat16)
        vh = qkv[:, 2 * D + lo:2 * D + lo + head_dim].reshape(bt, seq, head_dim).astype(jnp.bfloat16)

        att = jnp.einsum("bqd,bkd->bqk", qh, kh,
                         preferred_element_type=jnp.float32)     # (bt, S, S) f32
        att = jnp.exp(att - jnp.max(att, axis=-1, keepdims=True))
        att = att * pl.reciprocal(jnp.sum(att, axis=-1, keepdims=True), approx=True)

        oh = jnp.einsum("bqk,bkd->bqd", att.astype(jnp.bfloat16), vh,
                        preferred_element_type=jnp.float32)      # (bt, S, hd) f32
        contrib = jnp.dot(oh.reshape(rows, head_dim).astype(jnp.bfloat16),
                          wproj_ref[hi],                         # (hd, D) bf16
                          preferred_element_type=jnp.float32)
        proj_acc = contrib if proj_acc is None else proj_acc + contrib

    x1 = x + proj_acc + bproj_ref[...]                           # residual 1

    # ---- LayerNorm 2 + MLP (Linear -> exact GELU -> Linear) + residual ----
    h2 = _layernorm(x1, ln2_g_ref[...], ln2_b_ref[...])
    m = jnp.dot(h2.astype(jnp.bfloat16), w1_ref[...],
                preferred_element_type=jnp.float32) + b1_ref[...]
    m = 0.5 * m * (1.0 + jax.lax.erf(m * (1.0 / math.sqrt(2.0))))  # exact GELU (torch default)
    m = jnp.dot(m.astype(jnp.bfloat16), w2_ref[...],
                preferred_element_type=jnp.float32) + b2_ref[...]

    out_ref[...] = (x1 + m).astype(out_ref.dtype)


def _pick_batch_tile(B, S, rows_target=256):
    """Smallest divisor of B whose row count reaches rows_target (else all of B)."""
    bt = B
    for d in range(1, B + 1):
        if B % d == 0 and d * S >= rows_target:
            bt = d
            break
    # Mosaic block constraint: the row dim of a (bt*S, D) block must be a
    # multiple of 8 unless it spans the whole B*S axis.
    if bt != B and (bt * S) % 8 != 0:
        bt = B
    return bt


def transformer_block(x, params, *, num_heads):
    B, S, D = x.shape
    head_dim = D // num_heads

    (ln1_g, ln1_b, wqkv, bqkv, wproj, bproj,
     ln2_g, ln2_b, w1, b1, w2, b2) = params
    mlp_dim = w1.shape[1]

    # Fold the 1/sqrt(head_dim) attention scale into the Q columns of the QKV
    # weight & bias (zero in-kernel cost).
    scale = 1.0 / math.sqrt(head_dim)
    wqkv_s = wqkv.at[:, :D].multiply(scale)
    bqkv_s = bqkv.at[:, :D].multiply(scale)

    # MXU weights go in as bf16; LN params / biases stay f32.  The projection
    # weight is pre-split per head so the kernel indexes a clean (hd, D) slab.
    kernel_params = [
        ln1_g, ln1_b,
        wqkv_s.astype(jnp.bfloat16), bqkv_s,
        wproj.reshape(num_heads, head_dim, D).astype(jnp.bfloat16), bproj,
        ln2_g, ln2_b,
        w1.astype(jnp.bfloat16), b1,
        w2.astype(jnp.bfloat16), b2,
    ]

    bt = _pick_batch_tile(B, S)
    num_tiles = B // bt
    rows = bt * S

    x_flat = x.reshape(B * S, D)
    row_spec = pl.BlockSpec((rows, D), lambda i: (i, 0))

    kernel = functools.partial(
        transformer_block_kernel, bt=bt, seq=S,
        num_heads=num_heads, head_dim=head_dim)

    # Generation-aware VMEM budget: actual need (+50% headroom), capped at 85%
    # of physical VMEM so Mosaic keeps scratch/spill headroom (v7x: 64 MiB).
    try:
        vmem_cap = int(pltpu.get_tpu_info().vmem_capacity_bytes)
    except Exception:
        vmem_cap = 64 << 20
    f32b, bf16b = 4, 2
    weight_bytes = (D * 3 * D + D * D + D * mlp_dim + mlp_dim * D) * bf16b
    small_bytes = (7 * D + 3 * D + mlp_dim) * f32b
    act_bytes = rows * (8 * D + 2 * mlp_dim) * f32b + 2 * bt * S * S * f32b
    io_bytes = 2 * 2 * rows * D * f32b
    vmem_limit = int(1.5 * (2 * weight_bytes + small_bytes + act_bytes + io_bytes))
    vmem_limit = max(8 << 20, min(vmem_limit, int(0.85 * vmem_cap)))

    def run(single_buffer_weights):
        def param_spec(arr):
            nd = arr.ndim
            index_map = lambda i, _nd=nd: (0,) * _nd
            if single_buffer_weights:
                # Grid-invariant operands: no double-buffering (halves their
                # VMEM footprint; matters on v7x at production D).
                return pl.BlockSpec(arr.shape, index_map,
                                    pipeline_mode=pl.Buffered(1))
            return pl.BlockSpec(arr.shape, index_map)

        return pl.pallas_call(
            kernel,
            out_shape=jax.ShapeDtypeStruct((B * S, D), x.dtype),
            grid_spec=pltpu.PrefetchScalarGridSpec(
                num_scalar_prefetch=0,
                grid=(num_tiles,),
                in_specs=[row_spec] + [param_spec(p) for p in kernel_params],
                out_specs=row_spec,
            ),
            compiler_params=pltpu.CompilerParams(
                dimension_semantics=("parallel",),
                vmem_limit_bytes=vmem_limit),
        )(x_flat, *kernel_params)

    try:
        out_flat = jax.block_until_ready(run(True))
    except Exception:
        # pl.Buffered single-buffering unavailable on this jax version; fall
        # back to default double-buffered invariant operands.
        out_flat = run(False)

    return out_flat.reshape(B, S, D)


def init_params(key, embed_dim, num_heads, mlp_ratio):
    D = embed_dim
    mlp_dim = int(D * mlp_ratio)
    ks = jax.random.split(key, 6)
    s = 0.02
    # Weights are stored transposed relative to torch.nn.Linear (shape (in, out))
    # so the kernel can do x @ W + b directly.
    ln1_g = jnp.ones((1, D), jnp.float32)
    ln1_b = jnp.zeros((1, D), jnp.float32)
    wqkv = s * jax.random.normal(ks[0], (D, 3 * D), jnp.float32)
    bqkv = s * jax.random.normal(ks[1], (1, 3 * D), jnp.float32)
    wproj = s * jax.random.normal(ks[2], (D, D), jnp.float32)
    bproj = jnp.zeros((1, D), jnp.float32)
    ln2_g = jnp.ones((1, D), jnp.float32)
    ln2_b = jnp.zeros((1, D), jnp.float32)
    w1 = s * jax.random.normal(ks[3], (D, mlp_dim), jnp.float32)
    b1 = s * jax.random.normal(ks[4], (1, mlp_dim), jnp.float32)
    w2 = s * jax.random.normal(ks[5], (mlp_dim, D), jnp.float32)
    b2 = jnp.zeros((1, D), jnp.float32)
    return (ln1_g, ln1_b, wqkv, bqkv, wproj, bproj,
            ln2_g, ln2_b, w1, b1, w2, b2)


def reference_transformer_block(x, params, *, num_heads):
    """Pure-JAX f32 reference matching the PyTorch forward (dropout = identity)."""
    (ln1_g, ln1_b, wqkv, bqkv, wproj, bproj,
     ln2_g, ln2_b, w1, b1, w2, b2) = params
    B, S, D = x.shape
    hd = D // num_heads

    def ln(v, g, b):
        mu = jnp.mean(v, -1, keepdims=True)
        var = jnp.mean((v - mu) ** 2, -1, keepdims=True)
        return (v - mu) / jnp.sqrt(var + 1e-5) * g + b

    h = ln(x, ln1_g[0], ln1_b[0])
    qkv = h @ wqkv + bqkv[0]                               # (B,S,3D)
    qkv = qkv.reshape(B, S, 3, num_heads, hd).transpose(2, 0, 3, 1, 4)
    q, k, v = qkv[0], qkv[1], qkv[2]                       # (B,H,S,hd)
    att = jnp.einsum("bhqd,bhkd->bhqk", q, k) / math.sqrt(hd)
    att = jax.nn.softmax(att, axis=-1)
    o = jnp.einsum("bhqk,bhkd->bhqd", att, v)
    o = o.transpose(0, 2, 1, 3).reshape(B, S, D)
    x1 = x + (o @ wproj + bproj[0])
    h2 = ln(x1, ln2_g[0], ln2_b[0])
    m = h2 @ w1 + b1[0]
    m = 0.5 * m * (1.0 + jax.lax.erf(m / math.sqrt(2.0)))
    m = m @ w2 + b2[0]
    return x1 + m


if __name__ == "__main__":
    B, S, D = 2, 8, 32
    num_heads = 4
    mlp_ratio = 4

    key = jax.random.PRNGKey(0)
    kx, kp = jax.random.split(key)
    x = jax.random.normal(kx, (B, S, D), jnp.float32)
    params = init_params(kp, D, num_heads, mlp_ratio)

    out = jax.block_until_ready(transformer_block(x, params, num_heads=num_heads))

    ref = reference_transformer_block(x, params, num_heads=num_heads)
    assert out.shape == (B, S, D)
    # Tolerance relaxed vs the f32 reference: matmul operands go through bf16
    # (f32 accumulation kept) and the softmax denominator uses approx reciprocal.
    assert jnp.allclose(out, ref, atol=2e-2, rtol=2e-2), "mismatch vs reference"

    print("KERNEL_OK")
</pallas_src>

<mosaic_0001>
module attributes {stable_mosaic.version = 11 : i64} {
  func.func @transformer_block_kernel(%arg0: i32, %arg1: memref<16x32xf32, #tpu.memory_space<vmem>>, %arg2: memref<1x32xf32, #tpu.memory_space<vmem>>, %arg3: memref<1x32xf32, #tpu.memory_space<vmem>>, %arg4: memref<32x96xbf16, #tpu.memory_space<vmem>>, %arg5: memref<1x96xf32, #tpu.memory_space<vmem>>, %arg6: memref<4x8x32xbf16, #tpu.memory_space<vmem>>, %arg7: memref<1x32xf32, #tpu.memory_space<vmem>>, %arg8: memref<1x32xf32, #tpu.memory_space<vmem>>, %arg9: memref<1x32xf32, #tpu.memory_space<vmem>>, %arg10: memref<32x128xbf16, #tpu.memory_space<vmem>>, %arg11: memref<1x128xf32, #tpu.memory_space<vmem>>, %arg12: memref<128x32xbf16, #tpu.memory_space<vmem>>, %arg13: memref<1x32xf32, #tpu.memory_space<vmem>>, %arg14: memref<16x32xf32, #tpu.memory_space<vmem>>) attributes {dimension_semantics = [#tpu.dimension_semantics<parallel>], iteration_bounds = array<i64: 1>, scalar_prefetch = 0 : i64, scratch_operands = 0 : i64, tpu.core_type = #tpu.core_type<tc>, window_params = [{transform_indices = @transform_0, window_bounds = array<i64: 16, 32>}, {pipeline_mode = #tpu.pipeline_mode<synchronous>, transform_indices = @transform_1, window_bounds = array<i64: 1, 32>}, {pipeline_mode = #tpu.pipeline_mode<synchronous>, transform_indices = @transform_2, window_bounds = array<i64: 1, 32>}, {pipeline_mode = #tpu.pipeline_mode<synchronous>, transform_indices = @transform_3, window_bounds = array<i64: 32, 96>}, {pipeline_mode = #tpu.pipeline_mode<synchronous>, transform_indices = @transform_4, window_bounds = array<i64: 1, 96>}, {pipeline_mode = #tpu.pipeline_mode<synchronous>, transform_indices = @transform_5, window_bounds = array<i64: 4, 8, 32>}, {pipeline_mode = #tpu.pipeline_mode<synchronous>, transform_indices = @transform_6, window_bounds = array<i64: 1, 32>}, {pipeline_mode = #tpu.pipeline_mode<synchronous>, transform_indices = @transform_7, window_bounds = array<i64: 1, 32>}, {pipeline_mode = #tpu.pipeline_mode<synchronous>, transform_indices = @transform_8, window_bounds = array<i64: 1, 32>}, {pipeline_mode = #tpu.pipeline_mode<synchronous>, transform_indices = @transform_9, window_bounds = array<i64: 32, 128>}, {pipeline_mode = #tpu.pipeline_mode<synchronous>, transform_indices = @transform_10, window_bounds = array<i64: 1, 128>}, {pipeline_mode = #tpu.pipeline_mode<synchronous>, transform_indices = @transform_11, window_bounds = array<i64: 128, 32>}, {pipeline_mode = #tpu.pipeline_mode<synchronous>, transform_indices = @transform_12, window_bounds = array<i64: 1, 32>}, {transform_indices = @transform_13, window_bounds = array<i64: 16, 32>}]} {
    %c0 = arith.constant 0 : index
    %c0_0 = arith.constant 0 : index
    %0 = vector.load %arg1[%c0, %c0_0] : memref<16x32xf32, #tpu.memory_space<vmem>>, vector<16x32xf32>
    %c0_1 = arith.constant 0 : index
    %c0_2 = arith.constant 0 : index
    %1 = vector.load %arg2[%c0_1, %c0_2] : memref<1x32xf32, #tpu.memory_space<vmem>>, vector<1x32xf32>
    %c0_3 = arith.constant 0 : index
    %c0_4 = arith.constant 0 : index
    %2 = vector.load %arg3[%c0_3, %c0_4] : memref<1x32xf32, #tpu.memory_space<vmem>>, vector<1x32xf32>
    %cst = arith.constant dense<0.000000e+00> : vector<16xf32>
    %3 = vector.multi_reduction <add>, %0, %cst [1] : vector<16x32xf32> to vector<16xf32>
    %4 = vector.shape_cast %3 : vector<16xf32> to vector<16x1xf32>
    %cst_5 = arith.constant 3.200000e+01 : f32
    %5 = vector.broadcast %cst_5 : f32 to vector<16x1xf32>
    %6 = arith.divf %4, %5 : vector<16x1xf32>
    %7 = vector.broadcast %6 : vector<16x1xf32> to vector<16x32xf32>
    %8 = arith.subf %0, %7 : vector<16x32xf32>
    %9 = arith.mulf %8, %8 : vector<16x32xf32>
    %cst_6 = arith.constant dense<0.000000e+00> : vector<16xf32>
    %10 = vector.multi_reduction <add>, %9, %cst_6 [1] : vector<16x32xf32> to vector<16xf32>
    %11 = vector.shape_cast %10 : vector<16xf32> to vector<16x1xf32>
    %cst_7 = arith.constant 3.200000e+01 : f32
    %12 = vector.broadcast %cst_7 : f32 to vector<16x1xf32>
    %13 = arith.divf %11, %12 : vector<16x1xf32>
    %14 = vector.broadcast %6 : vector<16x1xf32> to vector<16x32xf32>
    %15 = arith.subf %0, %14 : vector<16x32xf32>
    %cst_8 = arith.constant 9.99999974E-6 : f32
    %16 = vector.broadcast %cst_8 : f32 to vector<16x1xf32>
    %17 = arith.addf %13, %16 : vector<16x1xf32>
    %18 = math.rsqrt %17 : vector<16x1xf32>
    %19 = vector.broadcast %18 : vector<16x1xf32> to vector<16x32xf32>
    %20 = arith.mulf %15, %19 : vector<16x32xf32>
    %21 = vector.broadcast %1 : vector<1x32xf32> to vector<16x32xf32>
    %22 = arith.mulf %20, %21 : vector<16x32xf32>
    %23 = vector.broadcast %2 : vector<1x32xf32> to vector<16x32xf32>
    %24 = arith.addf %22, %23 : vector<16x32xf32>
    %25 = arith.truncf %24 : vector<16x32xf32> to vector<16x32xbf16>
    %c0_9 = arith.constant 0 : index
    %c0_10 = arith.constant 0 : index
    %26 = vector.load %arg4[%c0_9, %c0_10] : memref<32x96xbf16, #tpu.memory_space<vmem>>, vector<32x96xbf16>
    %cst_11 = arith.constant dense<0.000000e+00> : vector<16x96xf32>
    %27 = tpu.matmul %25, %26, %cst_11 {dimension_numbers = #tpu.dot_dimension_numbers<[1], [0], [0], [1], [0, 0, 1, 1], [], []>} : vector<16x32xbf16>, vector<32x96xbf16>, vector<16x96xf32> -> vector<16x96xf32>
    %c0_12 = arith.constant 0 : index
    %c0_13 = arith.constant 0 : index
    %28 = vector.load %arg5[%c0_12, %c0_13] : memref<1x96xf32, #tpu.memory_space<vmem>>, vector<1x96xf32>
    %29 = vector.broadcast %28 : vector<1x96xf32> to vector<16x96xf32>
    %30 = arith.addf %27, %29 : vector<16x96xf32>
    %31 = vector.extract_strided_slice %30 {offsets = [0, 0], sizes = [16, 8], strides = [1, 1]} : vector<16x96xf32> to vector<16x8xf32>
    %32 = vector.shape_cast %31 : vector<16x8xf32> to vector<2x8x8xf32>
    %33 = arith.truncf %32 : vector<2x8x8xf32> to vector<2x8x8xbf16>
    %34 = vector.extract_strided_slice %30 {offsets = [0, 32], sizes = [16, 8], strides = [1, 1]} : vector<16x96xf32> to vector<16x8xf32>
    %35 = vector.shape_cast %34 : vector<16x8xf32> to vector<2x8x8xf32>
    %36 = arith.truncf %35 : vector<2x8x8xf32> to vector<2x8x8xbf16>
    %37 = vector.extract_strided_slice %30 {offsets = [0, 64], sizes = [16, 8], strides = [1, 1]} : vector<16x96xf32> to vector<16x8xf32>
    %38 = vector.shape_cast %37 : vector<16x8xf32> to vector<2x8x8xf32>
    %39 = arith.truncf %38 : vector<2x8x8xf32> to vector<2x8x8xbf16>
    "tpu.trace_start"() <{level = 10 : i32, message = "bqd,bkd->bqk"}> : () -> ()
    %cst_14 = arith.constant dense<0.000000e+00> : vector<2x8x8xf32>
    %40 = tpu.matmul %33, %36, %cst_14 {dimension_numbers = #tpu.dot_dimension_numbers<[2], [2], [1], [1], [0, 0, 0, 1, 1, 1], [0], [0]>} : vector<2x8x8xbf16>, vector<2x8x8xbf16>, vector<2x8x8xf32> -> vector<2x8x8xf32>
    "tpu.trace_stop"() : () -> ()
    %cst_15 = arith.constant dense<0xFF800000> : vector<2x8xf32>
    %41 = vector.multi_reduction <maximumf>, %40, %cst_15 [2] : vector<2x8x8xf32> to vector<2x8xf32>
    %42 = vector.shape_cast %41 : vector<2x8xf32> to vector<2x8x1xf32>
    %43 = vector.broadcast %42 : vector<2x8x1xf32> to vector<2x8x8xf32>
    %44 = arith.subf %40, %43 : vector<2x8x8xf32>
    %45 = math.exp %44 : vector<2x8x8xf32>
    %cst_16 = arith.constant dense<0.000000e+00> : vector<2x8xf32>
    %46 = vector.multi_reduction <add>, %45, %cst_16 [2] : vector<2x8x8xf32> to vector<2x8xf32>
    %47 = vector.shape_cast %46 : vector<2x8xf32> to vector<2x8x1xf32>
    %48 = tpu.reciprocal %47 {approx = true} : vector<2x8x1xf32> -> vector<2x8x1xf32>
    %49 = vector.broadcast %48 : vector<2x8x1xf32> to vector<2x8x8xf32>
    %50 = arith.mulf %45, %49 : vector<2x8x8xf32>
    %51 = arith.truncf %50 : vector<2x8x8xf32> to vector<2x8x8xbf16>
    "tpu.trace_start"() <{level = 10 : i32, message = "bqk,bkd->bqd"}> : () -> ()
    %cst_17 = arith.constant dense<0.000000e+00> : vector<2x8x8xf32>
    %52 = tpu.matmul %51, %39, %cst_17 {dimension_numbers = #tpu.dot_dimension_numbers<[2], [1], [1], [2], [0, 0, 0, 1, 1, 2], [0], [0]>} : vector<2x8x8xbf16>, vector<2x8x8xbf16>, vector<2x8x8xf32> -> vector<2x8x8xf32>
    "tpu.trace_stop"() : () -> ()
    %53 = vector.shape_cast %52 : vector<2x8x8xf32> to vector<16x8xf32>
    %54 = arith.truncf %53 : vector<16x8xf32> to vector<16x8xbf16>
    %c0_18 = arith.constant 0 : index
    %c0_19 = arith.constant 0 : index
    %c0_20 = arith.constant 0 : index
    %55 = vector.load %arg6[%c0_18, %c0_19, %c0_20] : memref<4x8x32xbf16, #tpu.memory_space<vmem>>, vector<1x8x32xbf16>
    %56 = vector.shape_cast %55 : vector<1x8x32xbf16> to vector<8x32xbf16>
    %cst_21 = arith.constant dense<0.000000e+00> : vector<16x32xf32>
    %57 = tpu.matmul %54, %56, %cst_21 {dimension_numbers = #tpu.dot_dimension_numbers<[1], [0], [0], [1], [0, 0, 1, 1], [], []>} : vector<16x8xbf16>, vector<8x32xbf16>, vector<16x32xf32> -> vector<16x32xf32>
    %58 = vector.extract_strided_slice %30 {offsets = [0, 8], sizes = [16, 8], strides = [1, 1]} : vector<16x96xf32> to vector<16x8xf32>
    %59 = vector.shape_cast %58 : vector<16x8xf32> to vector<2x8x8xf32>
    %60 = arith.truncf %59 : vector<2x8x8xf32> to vector<2x8x8xbf16>
    %61 = vector.extract_strided_slice %30 {offsets = [0, 40], sizes = [16, 8], strides = [1, 1]} : vector<16x96xf32> to vector<16x8xf32>
    %62 = vector.shape_cast %61 : vector<16x8xf32> to vector<2x8x8xf32>
    %63 = arith.truncf %62 : vector<2x8x8xf32> to vector<2x8x8xbf16>
    %64 = vector.extract_strided_slice %30 {offsets = [0, 72], sizes = [16, 8], strides = [1, 1]} : vector<16x96xf32> to vector<16x8xf32>
    %65 = vector.shape_cast %64 : vector<16x8xf32> to vector<2x8x8xf32>
    %66 = arith.truncf %65 : vector<2x8x8xf32> to vector<2x8x8xbf16>
    "tpu.trace_start"() <{level = 10 : i32, message = "bqd,bkd->bqk"}> : () -> ()
    %cst_22 = arith.constant dense<0.000000e+00> : vector<2x8x8xf32>
    %67 = tpu.matmul %60, %63, %cst_22 {dimension_numbers = #tpu.dot_dimension_numbers<[2], [2], [1], [1], [0, 0, 0, 1, 1, 1], [0], [0]>} : vector<2x8x8xbf16>, vector<2x8x8xbf16>, vector<2x8x8xf32> -> vector<2x8x8xf32>
    "tpu.trace_stop"() : () -> ()
    %cst_23 = arith.constant dense<0xFF800000> : vector<2x8xf32>
    %68 = vector.multi_reduction <maximumf>, %67, %cst_23 [2] : vector<2x8x8xf32> to vector<2x8xf32>
    %69 = vector.shape_cast %68 : vector<2x8xf32> to vector<2x8x1xf32>
    %70 = vector.broadcast %69 : vector<2x8x1xf32> to vector<2x8x8xf32>
    %71 = arith.subf %67, %70 : vector<2x8x8xf32>
    %72 = math.exp %71 : vector<2x8x8xf32>
    %cst_24 = arith.constant dense<0.000000e+00> : vector<2x8xf32>
    %73 = vector.multi_reduction <add>, %72, %cst_24 [2] : vector<2x8x8xf32> to vector<2x8xf32>
    %74 = vector.shape_cast %73 : vector<2x8xf32> to vector<2x8x1xf32>
    %75 = tpu.reciprocal %74 {approx = true} : vector<2x8x1xf32> -> vector<2x8x1xf32>
    %76 = vector.broadcast %75 : vector<2x8x1xf32> to vector<2x8x8xf32>
    %77 = arith.mulf %72, %76 : vector<2x8x8xf32>
    %78 = arith.truncf %77 : vector<2x8x8xf32> to vector<2x8x8xbf16>
    "tpu.trace_start"() <{level = 10 : i32, message = "bqk,bkd->bqd"}> : () -> ()
    %cst_25 = arith.constant dense<0.000000e+00> : vector<2x8x8xf32>
    %79 = tpu.matmul %78, %66, %cst_25 {dimension_numbers = #tpu.dot_dimension_numbers<[2], [1], [1], [2], [0, 0, 0, 1, 1, 2], [0], [0]>} : vector<2x8x8xbf16>, vector<2x8x8xbf16>, vector<2x8x8xf32> -> vector<2x8x8xf32>
    "tpu.trace_stop"() : () -> ()
    %80 = vector.shape_cast %79 : vector<2x8x8xf32> to vector<16x8xf32>
    %81 = arith.truncf %80 : vector<16x8xf32> to vector<16x8xbf16>
    %c1 = arith.constant 1 : index
    %c0_26 = arith.constant 0 : index
    %c0_27 = arith.constant 0 : index
    %82 = vector.load %arg6[%c1, %c0_26, %c0_27] : memref<4x8x32xbf16, #tpu.memory_space<vmem>>, vector<1x8x32xbf16>
    %83 = vector.shape_cast %82 : vector<1x8x32xbf16> to vector<8x32xbf16>
    %cst_28 = arith.constant dense<0.000000e+00> : vector<16x32xf32>
    %84 = tpu.matmul %81, %83, %cst_28 {dimension_numbers = #tpu.dot_dimension_numbers<[1], [0], [0], [1], [0, 0, 1, 1], [], []>} : vector<16x8xbf16>, vector<8x32xbf16>, vector<16x32xf32> -> vector<16x32xf32>
    %85 = arith.addf %57, %84 : vector<16x32xf32>
    %86 = vector.extract_strided_slice %30 {offsets = [0, 16], sizes = [16, 8], strides = [1, 1]} : vector<16x96xf32> to vector<16x8xf32>
    %87 = vector.shape_cast %86 : vector<16x8xf32> to vector<2x8x8xf32>
    %88 = arith.truncf %87 : vector<2x8x8xf32> to vector<2x8x8xbf16>
    %89 = vector.extract_strided_slice %30 {offsets = [0, 48], sizes = [16, 8], strides = [1, 1]} : vector<16x96xf32> to vector<16x8xf32>
    %90 = vector.shape_cast %89 : vector<16x8xf32> to vector<2x8x8xf32>
    %91 = arith.truncf %90 : vector<2x8x8xf32> to vector<2x8x8xbf16>
    %92 = vector.extract_strided_slice %30 {offsets = [0, 80], sizes = [16, 8], strides = [1, 1]} : vector<16x96xf32> to vector<16x8xf32>
    %93 = vector.shape_cast %92 : vector<16x8xf32> to vector<2x8x8xf32>
    %94 = arith.truncf %93 : vector<2x8x8xf32> to vector<2x8x8xbf16>
    "tpu.trace_start"() <{level = 10 : i32, message = "bqd,bkd->bqk"}> : () -> ()
    %cst_29 = arith.constant dense<0.000000e+00> : vector<2x8x8xf32>
    %95 = tpu.matmul %88, %91, %cst_29 {dimension_numbers = #tpu.dot_dimension_numbers<[2], [2], [1], [1], [0, 0, 0, 1, 1, 1], [0], [0]>} : vector<2x8x8xbf16>, vector<2x8x8xbf16>, vector<2x8x8xf32> -> vector<2x8x8xf32>
    "tpu.trace_stop"() : () -> ()
    %cst_30 = arith.constant dense<0xFF800000> : vector<2x8xf32>
    %96 = vector.multi_reduction <maximumf>, %95, %cst_30 [2] : vector<2x8x8xf32> to vector<2x8xf32>
    %97 = vector.shape_cast %96 : vector<2x8xf32> to vector<2x8x1xf32>
    %98 = vector.broadcast %97 : vector<2x8x1xf32> to vector<2x8x8xf32>
    %99 = arith.subf %95, %98 : vector<2x8x8xf32>
    %100 = math.exp %99 : vector<2x8x8xf32>
    %cst_31 = arith.constant dense<0.000000e+00> : vector<2x8xf32>
    %101 = vector.multi_reduction <add>, %100, %cst_31 [2] : vector<2x8x8xf32> to vector<2x8xf32>
    %102 = vector.shape_cast %101 : vector<2x8xf32> to vector<2x8x1xf32>
    %103 = tpu.reciprocal %102 {approx = true} : vector<2x8x1xf32> -> vector<2x8x1xf32>
    %104 = vector.broadcast %103 : vector<2x8x1xf32> to vector<2x8x8xf32>
    %105 = arith.mulf %100, %104 : vector<2x8x8xf32>
    %106 = arith.truncf %105 : vector<2x8x8xf32> to vector<2x8x8xbf16>
    "tpu.trace_start"() <{level = 10 : i32, message = "bqk,bkd->bqd"}> : () -> ()
    %cst_32 = arith.constant dense<0.000000e+00> : vector<2x8x8xf32>
    %107 = tpu.matmul %106, %94, %cst_32 {dimension_numbers = #tpu.dot_dimension_numbers<[2], [1], [1], [2], [0, 0, 0, 1, 1, 2], [0], [0]>} : vector<2x8x8xbf16>, vector<2x8x8xbf16>, vector<2x8x8xf32> -> vector<2x8x8xf32>
    "tpu.trace_stop"() : () -> ()
    %108 = vector.shape_cast %107 : vector<2x8x8xf32> to vector<16x8xf32>
    %109 = arith.truncf %108 : vector<16x8xf32> to vector<16x8xbf16>
    %c2 = arith.constant 2 : index
    %c0_33 = arith.constant 0 : index
    %c0_34 = arith.constant 0 : index
    %110 = vector.load %arg6[%c2, %c0_33, %c0_34] : memref<4x8x32xbf16, #tpu.memory_space<vmem>>, vector<1x8x32xbf16>
    %111 = vector.shape_cast %110 : vector<1x8x32xbf16> to vector<8x32xbf16>
    %cst_35 = arith.constant dense<0.000000e+00> : vector<16x32xf32>
    %112 = tpu.matmul %109, %111, %cst_35 {dimension_numbers = #tpu.dot_dimension_numbers<[1], [0], [0], [1], [0, 0, 1, 1], [], []>} : vector<16x8xbf16>, vector<8x32xbf16>, vector<16x32xf32> -> vector<16x32xf32>
    %113 = arith.addf %85, %112 : vector<16x32xf32>
    %114 = vector.extract_strided_slice %30 {offsets = [0, 24], sizes = [16, 8], strides = [1, 1]} : vector<16x96xf32> to vector<16x8xf32>
    %115 = vector.shape_cast %114 : vector<16x8xf32> to vector<2x8x8xf32>
    %116 = arith.truncf %115 : vector<2x8x8xf32> to vector<2x8x8xbf16>
    %117 = vector.extract_strided_slice %30 {offsets = [0, 56], sizes = [16, 8], strides = [1, 1]} : vector<16x96xf32> to vector<16x8xf32>
    %118 = vector.shape_cast %117 : vector<16x8xf32> to vector<2x8x8xf32>
    %119 = arith.truncf %118 : vector<2x8x8xf32> to vector<2x8x8xbf16>
    %120 = vector.extract_strided_slice %30 {offsets = [0, 88], sizes = [16, 8], strides = [1, 1]} : vector<16x96xf32> to vector<16x8xf32>
    %121 = vector.shape_cast %120 : vector<16x8xf32> to vector<2x8x8xf32>
    %122 = arith.truncf %121 : vector<2x8x8xf32> to vector<2x8x8xbf16>
    "tpu.trace_start"() <{level = 10 : i32, message = "bqd,bkd->bqk"}> : () -> ()
    %cst_36 = arith.constant dense<0.000000e+00> : vector<2x8x8xf32>
    %123 = tpu.matmul %116, %119, %cst_36 {dimension_numbers = #tpu.dot_dimension_numbers<[2], [2], [1], [1], [0, 0, 0, 1, 1, 1], [0], [0]>} : vector<2x8x8xbf16>, vector<2x8x8xbf16>, vector<2x8x8xf32> -> vector<2x8x8xf32>
    "tpu.trace_stop"() : () -> ()
    %cst_37 = arith.constant dense<0xFF800000> : vector<2x8xf32>
    %124 = vector.multi_reduction <maximumf>, %123, %cst_37 [2] : vector<2x8x8xf32> to vector<2x8xf32>
    %125 = vector.shape_cast %124 : vector<2x8xf32> to vector<2x8x1xf32>
    %126 = vector.broadcast %125 : vector<2x8x1xf32> to vector<2x8x8xf32>
    %127 = arith.subf %123, %126 : vector<2x8x8xf32>
    %128 = math.exp %127 : vector<2x8x8xf32>
    %cst_38 = arith.constant dense<0.000000e+00> : vector<2x8xf32>
    %129 = vector.multi_reduction <add>, %128, %cst_38 [2] : vector<2x8x8xf32> to vector<2x8xf32>
    %130 = vector.shape_cast %129 : vector<2x8xf32> to vector<2x8x1xf32>
    %131 = tpu.reciprocal %130 {approx = true} : vector<2x8x1xf32> -> vector<2x8x1xf32>
    %132 = vector.broadcast %131 : vector<2x8x1xf32> to vector<2x8x8xf32>
    %133 = arith.mulf %128, %132 : vector<2x8x8xf32>
    %134 = arith.truncf %133 : vector<2x8x8xf32> to vector<2x8x8xbf16>
    "tpu.trace_start"() <{level = 10 : i32, message = "bqk,bkd->bqd"}> : () -> ()
    %cst_39 = arith.constant dense<0.000000e+00> : vector<2x8x8xf32>
    %135 = tpu.matmul %134, %122, %cst_39 {dimension_numbers = #tpu.dot_dimension_numbers<[2], [1], [1], [2], [0, 0, 0, 1, 1, 2], [0], [0]>} : vector<2x8x8xbf16>, vector<2x8x8xbf16>, vector<2x8x8xf32> -> vector<2x8x8xf32>
    "tpu.trace_stop"() : () -> ()
    %136 = vector.shape_cast %135 : vector<2x8x8xf32> to vector<16x8xf32>
    %137 = arith.truncf %136 : vector<16x8xf32> to vector<16x8xbf16>
    %c3 = arith.constant 3 : index
    %c0_40 = arith.constant 0 : index
    %c0_41 = arith.constant 0 : index
    %138 = vector.load %arg6[%c3, %c0_40, %c0_41] : memref<4x8x32xbf16, #tpu.memory_space<vmem>>, vector<1x8x32xbf16>
    %139 = vector.shape_cast %138 : vector<1x8x32xbf16> to vector<8x32xbf16>
    %cst_42 = arith.constant dense<0.000000e+00> : vector<16x32xf32>
    %140 = tpu.matmul %137, %139, %cst_42 {dimension_numbers = #tpu.dot_dimension_numbers<[1], [0], [0], [1], [0, 0, 1, 1], [], []>} : vector<16x8xbf16>, vector<8x32xbf16>, vector<16x32xf32> -> vector<16x32xf32>
    %141 = arith.addf %113, %140 : vector<16x32xf32>
    %142 = arith.addf %0, %141 : vector<16x32xf32>
    %c0_43 = arith.constant 0 : index
    %c0_44 = arith.constant 0 : index
    %143 = vector.load %arg7[%c0_43, %c0_44] : memref<1x32xf32, #tpu.memory_space<vmem>>, vector<1x32xf32>
    %144 = vector.broadcast %143 : vector<1x32xf32> to vector<16x32xf32>
    %145 = arith.addf %142, %144 : vector<16x32xf32>
    %c0_45 = arith.constant 0 : index
    %c0_46 = arith.constant 0 : index
    %146 = vector.load %arg8[%c0_45, %c0_46] : memref<1x32xf32, #tpu.memory_space<vmem>>, vector<1x32xf32>
    %c0_47 = arith.constant 0 : index
    %c0_48 = arith.constant 0 : index
    %147 = vector.load %arg9[%c0_47, %c0_48] : memref<1x32xf32, #tpu.memory_space<vmem>>, vector<1x32xf32>
    %cst_49 = arith.constant dense<0.000000e+00> : vector<16xf32>
    %148 = vector.multi_reduction <add>, %145, %cst_49 [1] : vector<16x32xf32> to vector<16xf32>
    %149 = vector.shape_cast %148 : vector<16xf32> to vector<16x1xf32>
    %cst_50 = arith.constant 3.200000e+01 : f32
    %150 = vector.broadcast %cst_50 : f32 to vector<16x1xf32>
    %151 = arith.divf %149, %150 : vector<16x1xf32>
    %152 = vector.broadcast %151 : vector<16x1xf32> to vector<16x32xf32>
    %153 = arith.subf %145, %152 : vector<16x32xf32>
    %154 = arith.mulf %153, %153 : vector<16x32xf32>
    %cst_51 = arith.constant dense<0.000000e+00> : vector<16xf32>
    %155 = vector.multi_reduction <add>, %154, %cst_51 [1] : vector<16x32xf32> to vector<16xf32>
    %156 = vector.shape_cast %155 : vector<16xf32> to vector<16x1xf32>
    %cst_52 = arith.constant 3.200000e+01 : f32
    %157 = vector.broadcast %cst_52 : f32 to vector<16x1xf32>
    %158 = arith.divf %156, %157 : vector<16x1xf32>
    %159 = vector.broadcast %151 : vector<16x1xf32> to vector<16x32xf32>
    %160 = arith.subf %145, %159 : vector<16x32xf32>
    %cst_53 = arith.constant 9.99999974E-6 : f32
    %161 = vector.broadcast %cst_53 : f32 to vector<16x1xf32>
    %162 = arith.addf %158, %161 : vector<16x1xf32>
    %163 = math.rsqrt %162 : vector<16x1xf32>
    %164 = vector.broadcast %163 : vector<16x1xf32> to vector<16x32xf32>
    %165 = arith.mulf %160, %164 : vector<16x32xf32>
    %166 = vector.broadcast %146 : vector<1x32xf32> to vector<16x32xf32>
    %167 = arith.mulf %165, %166 : vector<16x32xf32>
    %168 = vector.broadcast %147 : vector<1x32xf32> to vector<16x32xf32>
    %169 = arith.addf %167, %168 : vector<16x32xf32>
    %170 = arith.truncf %169 : vector<16x32xf32> to vector<16x32xbf16>
    %c0_54 = arith.constant 0 : index
    %c0_55 = arith.constant 0 : index
    %171 = vector.load %arg10[%c0_54, %c0_55] : memref<32x128xbf16, #tpu.memory_space<vmem>>, vector<32x128xbf16>
    %cst_56 = arith.constant dense<0.000000e+00> : vector<16x128xf32>
    %172 = tpu.matmul %170, %171, %cst_56 {dimension_numbers = #tpu.dot_dimension_numbers<[1], [0], [0], [1], [0, 0, 1, 1], [], []>} : vector<16x32xbf16>, vector<32x128xbf16>, vector<16x128xf32> -> vector<16x128xf32>
    %c0_57 = arith.constant 0 : index
    %c0_58 = arith.constant 0 : index
    %173 = vector.load %arg11[%c0_57, %c0_58] : memref<1x128xf32, #tpu.memory_space<vmem>>, vector<1x128xf32>
    %174 = vector.broadcast %173 : vector<1x128xf32> to vector<16x128xf32>
    %175 = arith.addf %172, %174 : vector<16x128xf32>
    %cst_59 = arith.constant 5.000000e-01 : f32
    %176 = vector.broadcast %cst_59 : f32 to vector<16x128xf32>
    %177 = arith.mulf %176, %175 : vector<16x128xf32>
    %cst_60 = arith.constant 0.707106769 : f32
    %178 = vector.broadcast %cst_60 : f32 to vector<16x128xf32>
    %179 = arith.mulf %175, %178 : vector<16x128xf32>
    %180 = math.erf %179 : vector<16x128xf32>
    %cst_61 = arith.constant 1.000000e+00 : f32
    %181 = vector.broadcast %cst_61 : f32 to vector<16x128xf32>
    %182 = arith.addf %181, %180 : vector<16x128xf32>
    %183 = arith.mulf %177, %182 : vector<16x128xf32>
    %184 = arith.truncf %183 : vector<16x128xf32> to vector<16x128xbf16>
    %c0_62 = arith.constant 0 : index
    %c0_63 = arith.constant 0 : index
    %185 = vector.load %arg12[%c0_62, %c0_63] : memref<128x32xbf16, #tpu.memory_space<vmem>>, vector<128x32xbf16>
    %cst_64 = arith.constant dense<0.000000e+00> : vector<16x32xf32>
    %186 = tpu.matmul %184, %185, %cst_64 {dimension_numbers = #tpu.dot_dimension_numbers<[1], [0], [0], [1], [0, 0, 1, 1], [], []>} : vector<16x128xbf16>, vector<128x32xbf16>, vector<16x32xf32> -> vector<16x32xf32>
    %c0_65 = arith.constant 0 : index
    %c0_66 = arith.constant 0 : index
    %187 = vector.load %arg13[%c0_65, %c0_66] : memref<1x32xf32, #tpu.memory_space<vmem>>, vector<1x32xf32>
    %188 = vector.broadcast %187 : vector<1x32xf32> to vector<16x32xf32>
    %189 = arith.addf %186, %188 : vector<16x32xf32>
    %190 = arith.addf %145, %189 : vector<16x32xf32>
    %c0_67 = arith.constant 0 : index
    %c0_68 = arith.constant 0 : index
    %191 = vector.load %arg14[%c0_67, %c0_68] : memref<16x32xf32, #tpu.memory_space<vmem>>, vector<16x32xf32>
    tpu.vector_store %arg14[%c0_67, %c0_68], %190 {strides = array<i32>} : memref<16x32xf32, #tpu.memory_space<vmem>>, vector<16x32xf32>,
    return
  }
  func.func @transform_0(%arg0: i32) -> (i32, i32) {
    %c0_i32 = arith.constant 0 : i32
    %c0_i32_0 = arith.constant 0 : i32
    return %arg0, %c0_i32 : i32, i32
  }
  func.func @transform_1(%arg0: i32) -> (i32, i32) {
    %c0_i32 = arith.constant 0 : i32
    %c0_i32_0 = arith.constant 0 : i32
    %c0_i32_1 = arith.constant 0 : i32
    return %c0_i32, %c0_i32_0 : i32, i32
  }
  func.func @transform_2(%arg0: i32) -> (i32, i32) {
    %c0_i32 = arith.constant 0 : i32
    %c0_i32_0 = arith.constant 0 : i32
    %c0_i32_1 = arith.constant 0 : i32
    return %c0_i32, %c0_i32_0 : i32, i32
  }
  func.func @transform_3(%arg0: i32) -> (i32, i32) {
    %c0_i32 = arith.constant 0 : i32
    %c0_i32_0 = arith.constant 0 : i32
    %c0_i32_1 = arith.constant 0 : i32
    return %c0_i32, %c0_i32_0 : i32, i32
  }
  func.func @transform_4(%arg0: i32) -> (i32, i32) {
    %c0_i32 = arith.constant 0 : i32
    %c0_i32_0 = arith.constant 0 : i32
    %c0_i32_1 = arith.constant 0 : i32
    return %c0_i32, %c0_i32_0 : i32, i32
  }
  func.func @transform_5(%arg0: i32) -> (i32, i32, i32) {
    %c0_i32 = arith.constant 0 : i32
    %c0_i32_0 = arith.constant 0 : i32
    %c0_i32_1 = arith.constant 0 : i32
    %c0_i32_2 = arith.constant 0 : i32
    return %c0_i32, %c0_i32_0, %c0_i32_1 : i32, i32, i32
  }
  func.func @transform_6(%arg0: i32) -> (i32, i32) {
    %c0_i32 = arith.constant 0 : i32
    %c0_i32_0 = arith.constant 0 : i32
    %c0_i32_1 = arith.constant 0 : i32
    return %c0_i32, %c0_i32_0 : i32, i32
  }
  func.func @transform_7(%arg0: i32) -> (i32, i32) {
    %c0_i32 = arith.constant 0 : i32
    %c0_i32_0 = arith.constant 0 : i32
    %c0_i32_1 = arith.constant 0 : i32
    return %c0_i32, %c0_i32_0 : i32, i32
  }
  func.func @transform_8(%arg0: i32) -> (i32, i32) {
    %c0_i32 = arith.constant 0 : i32
    %c0_i32_0 = arith.constant 0 : i32
    %c0_i32_1 = arith.constant 0 : i32
    return %c0_i32, %c0_i32_0 : i32, i32
  }
  func.func @transform_9(%arg0: i32) -> (i32, i32) {
    %c0_i32 = arith.constant 0 : i32
    %c0_i32_0 = arith.constant 0 : i32
    %c0_i32_1 = arith.constant 0 : i32
    return %c0_i32, %c0_i32_0 : i32, i32
  }
  func.func @transform_10(%arg0: i32) -> (i32, i32) {
    %c0_i32 = arith.constant 0 : i32
    %c0_i32_0 = arith.constant 0 : i32
    %c0_i32_1 = arith.constant 0 : i32
    return %c0_i32, %c0_i32_0 : i32, i32
  }
  func.func @transform_11(%arg0: i32) -> (i32, i32) {
    %c0_i32 = arith.constant 0 : i32
    %c0_i32_0 = arith.constant 0 : i32
    %c0_i32_1 = arith.constant 0 : i32
    return %c0_i32, %c0_i32_0 : i32, i32
  }
  func.func @transform_12(%arg0: i32) -> (i32, i32) {
    %c0_i32 = arith.constant 0 : i32
    %c0_i32_0 = arith.constant 0 : i32
    %c0_i32_1 = arith.constant 0 : i32
    return %c0_i32, %c0_i32_0 : i32, i32
  }
  func.func @transform_13(%arg0: i32) -> (i32, i32) {
    %c0_i32 = arith.constant 0 : i32
    %c0_i32_0 = arith.constant 0 : i32
    return %arg0, %c0_i32 : i32, i32
  }
}

module attributes {stable_mosaic.version = 11 : i64} {
  func.func @transformer_block_kernel(%arg0: i32, %arg1: memref<16x32xf32, #tpu.memory_space<vmem>>, %arg2: memref<1x32xf32, #tpu.memory_space<vmem>>, %arg3: memref<1x32xf32, #tpu.memory_space<vmem>>, %arg4: memref<32x96xbf16, #tpu.memory_space<vmem>>, %arg5: memref<1x96xf32, #tpu.memory_space<vmem>>, %arg6: memref<4x8x32xbf16, #tpu.memory_space<vmem>>, %arg7: memref<1x32xf32, #tpu.memory_space<vmem>>, %arg8: memref<1x32xf32, #tpu.memory_space<vmem>>, %arg9: memref<1x32xf32, #tpu.memory_space<vmem>>, %arg10: memref<32x128xbf16, #tpu.memory_space<vmem>>, %arg11: memref<1x128xf32, #tpu.memory_space<vmem>>, %arg12: memref<128x32xbf16, #tpu.memory_space<vmem>>, %arg13: memref<1x32xf32, #tpu.memory_space<vmem>>, %arg14: memref<16x32xf32, #tpu.memory_space<vmem>>) attributes {dimension_semantics = [#tpu.dimension_semantics<parallel>], iteration_bounds = array<i64: 1>, scalar_prefetch = 0 : i64, scratch_operands = 0 : i64, tpu.core_type = #tpu.core_type<tc>, window_params = [{transform_indices = @transform_0, window_bounds = array<i64: 16, 32>}, {pipeline_mode = #tpu.pipeline_mode<synchronous>, transform_indices = @transform_1, window_bounds = array<i64: 1, 32>}, {pipeline_mode = #tpu.pipeline_mode<synchronous>, transform_indices = @transform_2, window_bounds = array<i64: 1, 32>}, {pipeline_mode = #tpu.pipeline_mode<synchronous>, transform_indices = @transform_3, window_bounds = array<i64: 32, 96>}, {pipeline_mode = #tpu.pipeline_mode<synchronous>, transform_indices = @transform_4, window_bounds = array<i64: 1, 96>}, {pipeline_mode = #tpu.pipeline_mode<synchronous>, transform_indices = @transform_5, window_bounds = array<i64: 4, 8, 32>}, {pipeline_mode = #tpu.pipeline_mode<synchronous>, transform_indices = @transform_6, window_bounds = array<i64: 1, 32>}, {pipeline_mode = #tpu.pipeline_mode<synchronous>, transform_indices = @transform_7, window_bounds = array<i64: 1, 32>}, {pipeline_mode = #tpu.pipeline_mode<synchronous>, transform_indices = @transform_8, window_bounds = array<i64: 1, 32>}, {pipeline_mode = #tpu.pipeline_mode<synchronous>, transform_indices = @transform_9, window_bounds = array<i64: 32, 128>}, {pipeline_mode = #tpu.pipeline_mode<synchronous>, transform_indices = @transform_10, window_bounds = array<i64: 1, 128>}, {pipeline_mode = #tpu.pipeline_mode<synchronous>, transform_indices = @transform_11, window_bounds = array<i64: 128, 32>}, {pipeline_mode = #tpu.pipeline_mode<synchronous>, transform_indices = @transform_12, window_bounds = array<i64: 1, 32>}, {transform_indices = @transform_13, window_bounds = array<i64: 16, 32>}]} {
    %c0 = arith.constant 0 : index
    %c0_0 = arith.constant 0 : index
    %0 = vector.load %arg1[%c0, %c0_0] : memref<16x32xf32, #tpu.memory_space<vmem>>, vector<16x32xf32>
    %c0_1 = arith.constant 0 : index
    %c0_2 = arith.constant 0 : index
    %1 = vector.load %arg2[%c0_1, %c0_2] : memref<1x32xf32, #tpu.memory_space<vmem>>, vector<1x32xf32>
    %c0_3 = arith.constant 0 : index
    %c0_4 = arith.constant 0 : index
    %2 = vector.load %arg3[%c0_3, %c0_4] : memref<1x32xf32, #tpu.memory_space<vmem>>, vector<1x32xf32>
    %cst = arith.constant dense<0.000000e+00> : vector<16xf32>
    %3 = vector.multi_reduction <add>, %0, %cst [1] : vector<16x32xf32> to vector<16xf32>
    %4 = vector.shape_cast %3 : vector<16xf32> to vector<16x1xf32>
    %cst_5 = arith.constant 3.200000e+01 : f32
    %5 = vector.broadcast %cst_5 : f32 to vector<16x1xf32>
    %6 = arith.divf %4, %5 : vector<16x1xf32>
    %7 = vector.broadcast %6 : vector<16x1xf32> to vector<16x32xf32>
    %8 = arith.subf %0, %7 : vector<16x32xf32>
    %9 = arith.mulf %8, %8 : vector<16x32xf32>
    %cst_6 = arith.constant dense<0.000000e+00> : vector<16xf32>
    %10 = vector.multi_reduction <add>, %9, %cst_6 [1] : vector<16x32xf32> to vector<16xf32>
    %11 = vector.shape_cast %10 : vector<16xf32> to vector<16x1xf32>
    %cst_7 = arith.constant 3.200000e+01 : f32
    %12 = vector.broadcast %cst_7 : f32 to vector<16x1xf32>
    %13 = arith.divf %11, %12 : vector<16x1xf32>
    %14 = vector.broadcast %6 : vector<16x1xf32> to vector<16x32xf32>
    %15 = arith.subf %0, %14 : vector<16x32xf32>
    %cst_8 = arith.constant 9.99999974E-6 : f32
    %16 = vector.broadcast %cst_8 : f32 to vector<16x1xf32>
    %17 = arith.addf %13, %16 : vector<16x1xf32>
    %18 = math.rsqrt %17 : vector<16x1xf32>
    %19 = vector.broadcast %18 : vector<16x1xf32> to vector<16x32xf32>
    %20 = arith.mulf %15, %19 : vector<16x32xf32>
    %21 = vector.broadcast %1 : vector<1x32xf32> to vector<16x32xf32>
    %22 = arith.mulf %20, %21 : vector<16x32xf32>
    %23 = vector.broadcast %2 : vector<1x32xf32> to vector<16x32xf32>
    %24 = arith.addf %22, %23 : vector<16x32xf32>
    %25 = arith.truncf %24 : vector<16x32xf32> to vector<16x32xbf16>
    %c0_9 = arith.constant 0 : index
    %c0_10 = arith.constant 0 : index
    %26 = vector.load %arg4[%c0_9, %c0_10] : memref<32x96xbf16, #tpu.memory_space<vmem>>, vector<32x96xbf16>
    %cst_11 = arith.constant dense<0.000000e+00> : vector<16x96xf32>
    %27 = tpu.matmul %25, %26, %cst_11 {dimension_numbers = #tpu.dot_dimension_numbers<[1], [0], [0], [1], [0, 0, 1, 1], [], []>} : vector<16x32xbf16>, vector<32x96xbf16>, vector<16x96xf32> -> vector<16x96xf32>
    %c0_12 = arith.constant 0 : index
    %c0_13 = arith.constant 0 : index
    %28 = vector.load %arg5[%c0_12, %c0_13] : memref<1x96xf32, #tpu.memory_space<vmem>>, vector<1x96xf32>
    %29 = vector.broadcast %28 : vector<1x96xf32> to vector<16x96xf32>
    %30 = arith.addf %27, %29 : vector<16x96xf32>
    %31 = vector.extract_strided_slice %30 {offsets = [0, 0], sizes = [16, 8], strides = [1, 1]} : vector<16x96xf32> to vector<16x8xf32>
    %32 = vector.shape_cast %31 : vector<16x8xf32> to vector<2x8x8xf32>
    %33 = arith.truncf %32 : vector<2x8x8xf32> to vector<2x8x8xbf16>
    %34 = vector.extract_strided_slice %30 {offsets = [0, 32], sizes = [16, 8], strides = [1, 1]} : vector<16x96xf32> to vector<16x8xf32>
    %35 = vector.shape_cast %34 : vector<16x8xf32> to vector<2x8x8xf32>
    %36 = arith.truncf %35 : vector<2x8x8xf32> to vector<2x8x8xbf16>
    %37 = vector.extract_strided_slice %30 {offsets = [0, 64], sizes = [16, 8], strides = [1, 1]} : vector<16x96xf32> to vector<16x8xf32>
    %38 = vector.shape_cast %37 : vector<16x8xf32> to vector<2x8x8xf32>
    %39 = arith.truncf %38 : vector<2x8x8xf32> to vector<2x8x8xbf16>
    "tpu.trace_start"() <{level = 10 : i32, message = "bqd,bkd->bqk"}> : () -> ()
    %cst_14 = arith.constant dense<0.000000e+00> : vector<2x8x8xf32>
    %40 = tpu.matmul %33, %36, %cst_14 {dimension_numbers = #tpu.dot_dimension_numbers<[2], [2], [1], [1], [0, 0, 0, 1, 1, 1], [0], [0]>} : vector<2x8x8xbf16>, vector<2x8x8xbf16>, vector<2x8x8xf32> -> vector<2x8x8xf32>
    "tpu.trace_stop"() : () -> ()
    %cst_15 = arith.constant dense<0xFF800000> : vector<2x8xf32>
    %41 = vector.multi_reduction <maximumf>, %40, %cst_15 [2] : vector<2x8x8xf32> to vector<2x8xf32>
    %42 = vector.shape_cast %41 : vector<2x8xf32> to vector<2x8x1xf32>
    %43 = vector.broadcast %42 : vector<2x8x1xf32> to vector<2x8x8xf32>
    %44 = arith.subf %40, %43 : vector<2x8x8xf32>
    %45 = math.exp %44 : vector<2x8x8xf32>
    %cst_16 = arith.constant dense<0.000000e+00> : vector<2x8xf32>
    %46 = vector.multi_reduction <add>, %45, %cst_16 [2] : vector<2x8x8xf32> to vector<2x8xf32>
    %47 = vector.shape_cast %46 : vector<2x8xf32> to vector<2x8x1xf32>
    %48 = tpu.reciprocal %47 {approx = true} : vector<2x8x1xf32> -> vector<2x8x1xf32>
    %49 = vector.broadcast %48 : vector<2x8x1xf32> to vector<2x8x8xf32>
    %50 = arith.mulf %45, %49 : vector<2x8x8xf32>
    %51 = arith.truncf %50 : vector<2x8x8xf32> to vector<2x8x8xbf16>
    "tpu.trace_start"() <{level = 10 : i32, message = "bqk,bkd->bqd"}> : () -> ()
    %cst_17 = arith.constant dense<0.000000e+00> : vector<2x8x8xf32>
    %52 = tpu.matmul %51, %39, %cst_17 {dimension_numbers = #tpu.dot_dimension_numbers<[2], [1], [1], [2], [0, 0, 0, 1, 1, 2], [0], [0]>} : vector<2x8x8xbf16>, vector<2x8x8xbf16>, vector<2x8x8xf32> -> vector<2x8x8xf32>
    "tpu.trace_stop"() : () -> ()
    %53 = vector.shape_cast %52 : vector<2x8x8xf32> to vector<16x8xf32>
    %54 = arith.truncf %53 : vector<16x8xf32> to vector<16x8xbf16>
    %c0_18 = arith.constant 0 : index
    %c0_19 = arith.constant 0 : index
    %c0_20 = arith.constant 0 : index
    %55 = vector.load %arg6[%c0_18, %c0_19, %c0_20] : memref<4x8x32xbf16, #tpu.memory_space<vmem>>, vector<1x8x32xbf16>
    %56 = vector.shape_cast %55 : vector<1x8x32xbf16> to vector<8x32xbf16>
    %cst_21 = arith.constant dense<0.000000e+00> : vector<16x32xf32>
    %57 = tpu.matmul %54, %56, %cst_21 {dimension_numbers = #tpu.dot_dimension_numbers<[1], [0], [0], [1], [0, 0, 1, 1], [], []>} : vector<16x8xbf16>, vector<8x32xbf16>, vector<16x32xf32> -> vector<16x32xf32>
    %58 = vector.extract_strided_slice %30 {offsets = [0, 8], sizes = [16, 8], strides = [1, 1]} : vector<16x96xf32> to vector<16x8xf32>
    %59 = vector.shape_cast %58 : vector<16x8xf32> to vector<2x8x8xf32>
    %60 = arith.truncf %59 : vector<2x8x8xf32> to vector<2x8x8xbf16>
    %61 = vector.extract_strided_slice %30 {offsets = [0, 40], sizes = [16, 8], strides = [1, 1]} : vector<16x96xf32> to vector<16x8xf32>
    %62 = vector.shape_cast %61 : vector<16x8xf32> to vector<2x8x8xf32>
    %63 = arith.truncf %62 : vector<2x8x8xf32> to vector<2x8x8xbf16>
    %64 = vector.extract_strided_slice %30 {offsets = [0, 72], sizes = [16, 8], strides = [1, 1]} : vector<16x96xf32> to vector<16x8xf32>
    %65 = vector.shape_cast %64 : vector<16x8xf32> to vector<2x8x8xf32>
    %66 = arith.truncf %65 : vector<2x8x8xf32> to vector<2x8x8xbf16>
    "tpu.trace_start"() <{level = 10 : i32, message = "bqd,bkd->bqk"}> : () -> ()
    %cst_22 = arith.constant dense<0.000000e+00> : vector<2x8x8xf32>
    %67 = tpu.matmul %60, %63, %cst_22 {dimension_numbers = #tpu.dot_dimension_numbers<[2], [2], [1], [1], [0, 0, 0, 1, 1, 1], [0], [0]>} : vector<2x8x8xbf16>, vector<2x8x8xbf16>, vector<2x8x8xf32> -> vector<2x8x8xf32>
    "tpu.trace_stop"() : () -> ()
    %cst_23 = arith.constant dense<0xFF800000> : vector<2x8xf32>
    %68 = vector.multi_reduction <maximumf>, %67, %cst_23 [2] : vector<2x8x8xf32> to vector<2x8xf32>
    %69 = vector.shape_cast %68 : vector<2x8xf32> to vector<2x8x1xf32>
    %70 = vector.broadcast %69 : vector<2x8x1xf32> to vector<2x8x8xf32>
    %71 = arith.subf %67, %70 : vector<2x8x8xf32>
    %72 = math.exp %71 : vector<2x8x8xf32>
    %cst_24 = arith.constant dense<0.000000e+00> : vector<2x8xf32>
    %73 = vector.multi_reduction <add>, %72, %cst_24 [2] : vector<2x8x8xf32> to vector<2x8xf32>
    %74 = vector.shape_cast %73 : vector<2x8xf32> to vector<2x8x1xf32>
    %75 = tpu.reciprocal %74 {approx = true} : vector<2x8x1xf32> -> vector<2x8x1xf32>
    %76 = vector.broadcast %75 : vector<2x8x1xf32> to vector<2x8x8xf32>
    %77 = arith.mulf %72, %76 : vector<2x8x8xf32>
    %78 = arith.truncf %77 : vector<2x8x8xf32> to vector<2x8x8xbf16>
    "tpu.trace_start"() <{level = 10 : i32, message = "bqk,bkd->bqd"}> : () -> ()
    %cst_25 = arith.constant dense<0.000000e+00> : vector<2x8x8xf32>
    %79 = tpu.matmul %78, %66, %cst_25 {dimension_numbers = #tpu.dot_dimension_numbers<[2], [1], [1], [2], [0, 0, 0, 1, 1, 2], [0], [0]>} : vector<2x8x8xbf16>, vector<2x8x8xbf16>, vector<2x8x8xf32> -> vector<2x8x8xf32>
    "tpu.trace_stop"() : () -> ()
    %80 = vector.shape_cast %79 : vector<2x8x8xf32> to vector<16x8xf32>
    %81 = arith.truncf %80 : vector<16x8xf32> to vector<16x8xbf16>
    %c1 = arith.constant 1 : index
    %c0_26 = arith.constant 0 : index
    %c0_27 = arith.constant 0 : index
    %82 = vector.load %arg6[%c1, %c0_26, %c0_27] : memref<4x8x32xbf16, #tpu.memory_space<vmem>>, vector<1x8x32xbf16>
    %83 = vector.shape_cast %82 : vector<1x8x32xbf16> to vector<8x32xbf16>
    %cst_28 = arith.constant dense<0.000000e+00> : vector<16x32xf32>
    %84 = tpu.matmul %81, %83, %cst_28 {dimension_numbers = #tpu.dot_dimension_numbers<[1], [0], [0], [1], [0, 0, 1, 1], [], []>} : vector<16x8xbf16>, vector<8x32xbf16>, vector<16x32xf32> -> vector<16x32xf32>
    %85 = arith.addf %57, %84 : vector<16x32xf32>
    %86 = vector.extract_strided_slice %30 {offsets = [0, 16], sizes = [16, 8], strides = [1, 1]} : vector<16x96xf32> to vector<16x8xf32>
    %87 = vector.shape_cast %86 : vector<16x8xf32> to vector<2x8x8xf32>
    %88 = arith.truncf %87 : vector<2x8x8xf32> to vector<2x8x8xbf16>
    %89 = vector.extract_strided_slice %30 {offsets = [0, 48], sizes = [16, 8], strides = [1, 1]} : vector<16x96xf32> to vector<16x8xf32>
    %90 = vector.shape_cast %89 : vector<16x8xf32> to vector<2x8x8xf32>
    %91 = arith.truncf %90 : vector<2x8x8xf32> to vector<2x8x8xbf16>
    %92 = vector.extract_strided_slice %30 {offsets = [0, 80], sizes = [16, 8], strides = [1, 1]} : vector<16x96xf32> to vector<16x8xf32>
    %93 = vector.shape_cast %92 : vector<16x8xf32> to vector<2x8x8xf32>
    %94 = arith.truncf %93 : vector<2x8x8xf32> to vector<2x8x8xbf16>
    "tpu.trace_start"() <{level = 10 : i32, message = "bqd,bkd->bqk"}> : () -> ()
    %cst_29 = arith.constant dense<0.000000e+00> : vector<2x8x8xf32>
    %95 = tpu.matmul %88, %91, %cst_29 {dimension_numbers = #tpu.dot_dimension_numbers<[2], [2], [1], [1], [0, 0, 0, 1, 1, 1], [0], [0]>} : vector<2x8x8xbf16>, vector<2x8x8xbf16>, vector<2x8x8xf32> -> vector<2x8x8xf32>
    "tpu.trace_stop"() : () -> ()
    %cst_30 = arith.constant dense<0xFF800000> : vector<2x8xf32>
    %96 = vector.multi_reduction <maximumf>, %95, %cst_30 [2] : vector<2x8x8xf32> to vector<2x8xf32>
    %97 = vector.shape_cast %96 : vector<2x8xf32> to vector<2x8x1xf32>
    %98 = vector.broadcast %97 : vector<2x8x1xf32> to vector<2x8x8xf32>
    %99 = arith.subf %95, %98 : vector<2x8x8xf32>
    %100 = math.exp %99 : vector<2x8x8xf32>
    %cst_31 = arith.constant dense<0.000000e+00> : vector<2x8xf32>
    %101 = vector.multi_reduction <add>, %100, %cst_31 [2] : vector<2x8x8xf32> to vector<2x8xf32>
    %102 = vector.shape_cast %101 : vector<2x8xf32> to vector<2x8x1xf32>
    %103 = tpu.reciprocal %102 {approx = true} : vector<2x8x1xf32> -> vector<2x8x1xf32>
    %104 = vector.broadcast %103 : vector<2x8x1xf32> to vector<2x8x8xf32>
    %105 = arith.mulf %100, %104 : vector<2x8x8xf32>
    %106 = arith.truncf %105 : vector<2x8x8xf32> to vector<2x8x8xbf16>
    "tpu.trace_start"() <{level = 10 : i32, message = "bqk,bkd->bqd"}> : () -> ()
    %cst_32 = arith.constant dense<0.000000e+00> : vector<2x8x8xf32>
    %107 = tpu.matmul %106, %94, %cst_32 {dimension_numbers = #tpu.dot_dimension_numbers<[2], [1], [1], [2], [0, 0, 0, 1, 1, 2], [0], [0]>} : vector<2x8x8xbf16>, vector<2x8x8xbf16>, vector<2x8x8xf32> -> vector<2x8x8xf32>
    "tpu.trace_stop"() : () -> ()
    %108 = vector.shape_cast %107 : vector<2x8x8xf32> to vector<16x8xf32>
    %109 = arith.truncf %108 : vector<16x8xf32> to vector<16x8xbf16>
    %c2 = arith.constant 2 : index
    %c0_33 = arith.constant 0 : index
    %c0_34 = arith.constant 0 : index
    %110 = vector.load %arg6[%c2, %c0_33, %c0_34] : memref<4x8x32xbf16, #tpu.memory_space<vmem>>, vector<1x8x32xbf16>
    %111 = vector.shape_cast %110 : vector<1x8x32xbf16> to vector<8x32xbf16>
    %cst_35 = arith.constant dense<0.000000e+00> : vector<16x32xf32>
    %112 = tpu.matmul %109, %111, %cst_35 {dimension_numbers = #tpu.dot_dimension_numbers<[1], [0], [0], [1], [0, 0, 1, 1], [], []>} : vector<16x8xbf16>, vector<8x32xbf16>, vector<16x32xf32> -> vector<16x32xf32>
    %113 = arith.addf %85, %112 : vector<16x32xf32>
    %114 = vector.extract_strided_slice %30 {offsets = [0, 24], sizes = [16, 8], strides = [1, 1]} : vector<16x96xf32> to vector<16x8xf32>
    %115 = vector.shape_cast %114 : vector<16x8xf32> to vector<2x8x8xf32>
    %116 = arith.truncf %115 : vector<2x8x8xf32> to vector<2x8x8xbf16>
    %117 = vector.extract_strided_slice %30 {offsets = [0, 56], sizes = [16, 8], strides = [1, 1]} : vector<16x96xf32> to vector<16x8xf32>
    %118 = vector.shape_cast %117 : vector<16x8xf32> to vector<2x8x8xf32>
    %119 = arith.truncf %118 : vector<2x8x8xf32> to vector<2x8x8xbf16>
    %120 = vector.extract_strided_slice %30 {offsets = [0, 88], sizes = [16, 8], strides = [1, 1]} : vector<16x96xf32> to vector<16x8xf32>
    %121 = vector.shape_cast %120 : vector<16x8xf32> to vector<2x8x8xf32>
    %122 = arith.truncf %121 : vector<2x8x8xf32> to vector<2x8x8xbf16>
    "tpu.trace_start"() <{level = 10 : i32, message = "bqd,bkd->bqk"}> : () -> ()
    %cst_36 = arith.constant dense<0.000000e+00> : vector<2x8x8xf32>
    %123 = tpu.matmul %116, %119, %cst_36 {dimension_numbers = #tpu.dot_dimension_numbers<[2], [2], [1], [1], [0, 0, 0, 1, 1, 1], [0], [0]>} : vector<2x8x8xbf16>, vector<2x8x8xbf16>, vector<2x8x8xf32> -> vector<2x8x8xf32>
    "tpu.trace_stop"() : () -> ()
    %cst_37 = arith.constant dense<0xFF800000> : vector<2x8xf32>
    %124 = vector.multi_reduction <maximumf>, %123, %cst_37 [2] : vector<2x8x8xf32> to vector<2x8xf32>
    %125 = vector.shape_cast %124 : vector<2x8xf32> to vector<2x8x1xf32>
    %126 = vector.broadcast %125 : vector<2x8x1xf32> to vector<2x8x8xf32>
    %127 = arith.subf %123, %126 : vector<2x8x8xf32>
    %128 = math.exp %127 : vector<2x8x8xf32>
    %cst_38 = arith.constant dense<0.000000e+00> : vector<2x8xf32>
    %129 = vector.multi_reduction <add>, %128, %cst_38 [2] : vector<2x8x8xf32> to vector<2x8xf32>
    %130 = vector.shape_cast %129 : vector<2x8xf32> to vector<2x8x1xf32>
    %131 = tpu.reciprocal %130 {approx = true} : vector<2x8x1xf32> -> vector<2x8x1xf32>
    %132 = vector.broadcast %131 : vector<2x8x1xf32> to vector<2x8x8xf32>
    %133 = arith.mulf %128, %132 : vector<2x8x8xf32>
    %134 = arith.truncf %133 : vector<2x8x8xf32> to vector<2x8x8xbf16>
    "tpu.trace_start"() <{level = 10 : i32, message = "bqk,bkd->bqd"}> : () -> ()
    %cst_39 = arith.constant dense<0.000000e+00> : vector<2x8x8xf32>
    %135 = tpu.matmul %134, %122, %cst_39 {dimension_numbers = #tpu.dot_dimension_numbers<[2], [1], [1], [2], [0, 0, 0, 1, 1, 2], [0], [0]>} : vector<2x8x8xbf16>, vector<2x8x8xbf16>, vector<2x8x8xf32> -> vector<2x8x8xf32>
    "tpu.trace_stop"() : () -> ()
    %136 = vector.shape_cast %135 : vector<2x8x8xf32> to vector<16x8xf32>
    %137 = arith.truncf %136 : vector<16x8xf32> to vector<16x8xbf16>
    %c3 = arith.constant 3 : index
    %c0_40 = arith.constant 0 : index
    %c0_41 = arith.constant 0 : index
    %138 = vector.load %arg6[%c3, %c0_40, %c0_41] : memref<4x8x32xbf16, #tpu.memory_space<vmem>>, vector<1x8x32xbf16>
    %139 = vector.shape_cast %138 : vector<1x8x32xbf16> to vector<8x32xbf16>
    %cst_42 = arith.constant dense<0.000000e+00> : vector<16x32xf32>
    %140 = tpu.matmul %137, %139, %cst_42 {dimension_numbers = #tpu.dot_dimension_numbers<[1], [0], [0], [1], [0, 0, 1, 1], [], []>} : vector<16x8xbf16>, vector<8x32xbf16>, vector<16x32xf32> -> vector<16x32xf32>
    %141 = arith.addf %113, %140 : vector<16x32xf32>
    %142 = arith.addf %0, %141 : vector<16x32xf32>
    %c0_43 = arith.constant 0 : index
    %c0_44 = arith.constant 0 : index
    %143 = vector.load %arg7[%c0_43, %c0_44] : memref<1x32xf32, #tpu.memory_space<vmem>>, vector<1x32xf32>
    %144 = vector.broadcast %143 : vector<1x32xf32> to vector<16x32xf32>
    %145 = arith.addf %142, %144 : vector<16x32xf32>
    %c0_45 = arith.constant 0 : index
    %c0_46 = arith.constant 0 : index
    %146 = vector.load %arg8[%c0_45, %c0_46] : memref<1x32xf32, #tpu.memory_space<vmem>>, vector<1x32xf32>
    %c0_47 = arith.constant 0 : index
    %c0_48 = arith.constant 0 : index
    %147 = vector.load %arg9[%c0_47, %c0_48] : memref<1x32xf32, #tpu.memory_space<vmem>>, vector<1x32xf32>
    %cst_49 = arith.constant dense<0.000000e+00> : vector<16xf32>
    %148 = vector.multi_reduction <add>, %145, %cst_49 [1] : vector<16x32xf32> to vector<16xf32>
    %149 = vector.shape_cast %148 : vector<16xf32> to vector<16x1xf32>
    %cst_50 = arith.constant 3.200000e+01 : f32
    %150 = vector.broadcast %cst_50 : f32 to vector<16x1xf32>
    %151 = arith.divf %149, %150 : vector<16x1xf32>
    %152 = vector.broadcast %151 : vector<16x1xf32> to vector<16x32xf32>
    %153 = arith.subf %145, %152 : vector<16x32xf32>
    %154 = arith.mulf %153, %153 : vector<16x32xf32>
    %cst_51 = arith.constant dense<0.000000e+00> : vector<16xf32>
    %155 = vector.multi_reduction <add>, %154, %cst_51 [1] : vector<16x32xf32> to vector<16xf32>
    %156 = vector.shape_cast %155 : vector<16xf32> to vector<16x1xf32>
    %cst_52 = arith.constant 3.200000e+01 : f32
    %157 = vector.broadcast %cst_52 : f32 to vector<16x1xf32>
    %158 = arith.divf %156, %157 : vector<16x1xf32>
    %159 = vector.broadcast %151 : vector<16x1xf32> to vector<16x32xf32>
    %160 = arith.subf %145, %159 : vector<16x32xf32>
    %cst_53 = arith.constant 9.99999974E-6 : f32
    %161 = vector.broadcast %cst_53 : f32 to vector<16x1xf32>
    %162 = arith.addf %158, %161 : vector<16x1xf32>
    %163 = math.rsqrt %162 : vector<16x1xf32>
    %164 = vector.broadcast %163 : vector<16x1xf32> to vector<16x32xf32>
    %165 = arith.mulf %160, %164 : vector<16x32xf32>
    %166 = vector.broadcast %146 : vector<1x32xf32> to vector<16x32xf32>
    %167 = arith.mulf %165, %166 : vector<16x32xf32>
    %168 = vector.broadcast %147 : vector<1x32xf32> to vector<16x32xf32>
    %169 = arith.addf %167, %168 : vector<16x32xf32>
    %170 = arith.truncf %169 : vector<16x32xf32> to vector<16x32xbf16>
    %c0_54 = arith.constant 0 : index
    %c0_55 = arith.constant 0 : index
    %171 = vector.load %arg10[%c0_54, %c0_55] : memref<32x128xbf16, #tpu.memory_space<vmem>>, vector<32x128xbf16>
    %cst_56 = arith.constant dense<0.000000e+00> : vector<16x128xf32>
    %172 = tpu.matmul %170, %171, %cst_56 {dimension_numbers = #tpu.dot_dimension_numbers<[1], [0], [0], [1], [0, 0, 1, 1], [], []>} : vector<16x32xbf16>, vector<32x128xbf16>, vector<16x128xf32> -> vector<16x128xf32>
    %c0_57 = arith.constant 0 : index
    %c0_58 = arith.constant 0 : index
    %173 = vector.load %arg11[%c0_57, %c0_58] : memref<1x128xf32, #tpu.memory_space<vmem>>, vector<1x128xf32>
    %174 = vector.broadcast %173 : vector<1x128xf32> to vector<16x128xf32>
    %175 = arith.addf %172, %174 : vector<16x128xf32>
    %cst_59 = arith.constant 5.000000e-01 : f32
    %176 = vector.broadcast %cst_59 : f32 to vector<16x128xf32>
    %177 = arith.mulf %176, %175 : vector<16x128xf32>
    %cst_60 = arith.constant 0.707106769 : f32
    %178 = vector.broadcast %cst_60 : f32 to vector<16x128xf32>
    %179 = arith.mulf %175, %178 : vector<16x128xf32>
    %180 = math.erf %179 : vector<16x128xf32>
    %cst_61 = arith.constant 1.000000e+00 : f32
    %181 = vector.broadcast %cst_61 : f32 to vector<16x128xf32>
    %182 = arith.addf %181, %180 : vector<16x128xf32>
    %183 = arith.mulf %177, %182 : vector<16x128xf32>
    %184 = arith.truncf %183 : vector<16x128xf32> to vector<16x128xbf16>
    %c0_62 = arith.constant 0 : index
    %c0_63 = arith.constant 0 : index
    %185 = vector.load %arg12[%c0_62, %c0_63] : memref<128x32xbf16, #tpu.memory_space<vmem>>, vector<128x32xbf16>
    %cst_64 = arith.constant dense<0.000000e+00> : vector<16x32xf32>
    %186 = tpu.matmul %184, %185, %cst_64 {dimension_numbers = #tpu.dot_dimension_numbers<[1], [0], [0], [1], [0, 0, 1, 1], [], []>} : vector<16x128xbf16>, vector<128x32xbf16>, vector<16x32xf32> -> vector<16x32xf32>
    %c0_65 = arith.constant 0 : index
    %c0_66 = arith.constant 0 : index
    %187 = vector.load %arg13[%c0_65, %c0_66] : memref<1x32xf32, #tpu.memory_space<vmem>>, vector<1x32xf32>
    %188 = vector.broadcast %187 : vector<1x32xf32> to vector<16x32xf32>
    %189 = arith.addf %186, %188 : vector<16x32xf32>
    %190 = arith.addf %145, %189 : vector<16x32xf32>
    %c0_67 = arith.constant 0 : index
    %c0_68 = arith.constant 0 : index
    %191 = vector.load %arg14[%c0_67, %c0_68] : memref<16x32xf32, #tpu.memory_space<vmem>>, vector<16x32xf32>
    tpu.vector_store %arg14[%c0_67, %c0_68], %190 {strides = array<i32>} : memref<16x32xf32, #tpu.memory_space<vmem>>, vector<16x32xf32>,
    return
  }
  func.func @transform_0(%arg0: i32) -> (i32, i32) {
    %c0_i32 = arith.constant 0 : i32
    %c0_i32_0 = arith.constant 0 : i32
    return %arg0, %c0_i32 : i32, i32
  }
  func.func @transform_1(%arg0: i32) -> (i32, i32) {
    %c0_i32 = arith.constant 0 : i32
    %c0_i32_0 = arith.constant 0 : i32
    %c0_i32_1 = arith.constant 0 : i32
    return %c0_i32, %c0_i32_0 : i32, i32
  }
  func.func @transform_2(%arg0: i32) -> (i32, i32) {
    %c0_i32 = arith.constant 0 : i32
    %c0_i32_0 = arith.constant 0 : i32
    %c0_i32_1 = arith.constant 0 : i32
    return %c0_i32, %c0_i32_0 : i32, i32
  }
  func.func @transform_3(%arg0: i32) -> (i32, i32) {
    %c0_i32 = arith.constant 0 : i32
    %c0_i32_0 = arith.constant 0 : i32
    %c0_i32_1 = arith.constant 0 : i32
    return %c0_i32, %c0_i32_0 : i32, i32
  }
  func.func @transform_4(%arg0: i32) -> (i32, i32) {
    %c0_i32 = arith.constant 0 : i32
    %c0_i32_0 = arith.constant 0 : i32
    %c0_i32_1 = arith.constant 0 : i32
    return %c0_i32, %c0_i32_0 : i32, i32
  }
  func.func @transform_5(%arg0: i32) -> (i32, i32, i32) {
    %c0_i32 = arith.constant 0 : i32
    %c0_i32_0 = arith.constant 0 : i32
    %c0_i32_1 = arith.constant 0 : i32
    %c0_i32_2 = arith.constant 0 : i32
    return %c0_i32, %c0_i32_0, %c0_i32_1 : i32, i32, i32
  }
  func.func @transform_6(%arg0: i32) -> (i32, i32) {
    %c0_i32 = arith.constant 0 : i32
    %c0_i32_0 = arith.constant 0 : i32
    %c0_i32_1 = arith.constant 0 : i32
    return %c0_i32, %c0_i32_0 : i32, i32
  }
  func.func @transform_7(%arg0: i32) -> (i32, i32) {
    %c0_i32 = arith.constant 0 : i32
    %c0_i32_0 = arith.constant 0 : i32
    %c0_i32_1 = arith.constant 0 : i32
    return %c0_i32, %c0_i32_0 : i32, i32
  }
  func.func @transform_8(%arg0: i32) -> (i32, i32) {
    %c0_i32 = arith.constant 0 : i32
    %c0_i32_0 = arith.constant 0 : i32
    %c0_i32_1 = arith.constant 0 : i32
    return %c0_i32, %c0_i32_0 : i32, i32
  }
  func.func @transform_9(%arg0: i32) -> (i32, i32) {
    %c0_i32 = arith.constant 0 : i32
    %c0_i32_0 = arith.constant 0 : i32
    %c0_i32_1 = arith.constant 0 : i32
    return %c0_i32, %c0_i32_0 : i32, i32
  }
  func.func @transform_10(%arg0: i32) -> (i32, i32) {
    %c0_i32 = arith.constant 0 : i32
    %c0_i32_0 = arith.constant 0 : i32
    %c0_i32_1 = arith.constant 0 : i32
    return %c0_i32, %c0_i32_0 : i32, i32
  }
  func.func @transform_11(%arg0: i32) -> (i32, i32) {
    %c0_i32 = arith.constant 0 : i32
    %c0_i32_0 = arith.constant 0 : i32
    %c0_i32_1 = arith.constant 0 : i32
    return %c0_i32, %c0_i32_0 : i32, i32
  }
  func.func @transform_12(%arg0: i32) -> (i32, i32) {
    %c0_i32 = arith.constant 0 : i32
    %c0_i32_0 = arith.constant 0 : i32
    %c0_i32_1 = arith.constant 0 : i32
    return %c0_i32, %c0_i32_0 : i32, i32
  }
  func.func @transform_13(%arg0: i32) -> (i32, i32) {
    %c0_i32 = arith.constant 0 : i32
    %c0_i32_0 = arith.constant 0 : i32
    return %arg0, %c0_i32 : i32, i32
  }
}

</mosaic_0001>

<bundles_post_ra>
// kernel: tpu_custom_call.1
= control target key start
LH: loop header
LB: loop body
LE: loop exit
PB: predicated region body
PF: predicated region fallthrough
CT: control target
= control target key end

     0   :  { %vm50_vm0 = vcmask 261120   ;;  %s2254_s0 = inlined_call_operand.vmem [shape: f32[16,32], index: 0, kind: input, shape index: {}]   ;;  %s2255_s1 = inlined_call_operand.vmem [shape: f32[1,32], index: 1, kind: input, shape index: {}]   ;;  %s2256_s2 = inlined_call_operand.vmem [shape: f32[1,32], index: 2, kind: input, shape index: {}]   ;;  %s2257_s3 = inlined_call_operand.vmem [shape: bf16[32,96], index: 3, kind: input, shape index: {}]   ;;  %s2258_s4 = inlined_call_operand.vmem [shape: f32[1,96], index: 4, kind: input, shape index: {}]   ;;  %s2259_s5 = inlined_call_operand.vmem [shape: bf16[4,8,32], index: 5, kind: input, shape index: {}]   ;;  %s2260_s6 = inlined_call_operand.vmem [shape: f32[1,32], index: 6, kind: input, shape index: {}]   ;;  %s2261_s7 = inlined_call_operand.vmem [shape: f32[1,32], index: 7, kind: input, shape index: {}]   ;;  %s2262_s8 = inlined_call_operand.vmem [shape: f32[1,32], index: 8, kind: input, shape index: {}]   ;;  %s2263_s9 = inlined_call_operand.vmem [shape: bf16[32,128], index: 9, kind: input, shape index: {}]   ;;  %s2264_s10 = inlined_call_operand.vmem [shape: f32[1,128], index: 10, kind: input, shape index: {}]   ;;  %s2265_s11 = inlined_call_operand.vmem [shape: bf16[128,32], index: 11, kind: input, shape index: {}]   ;;  %s2266_s12 = inlined_call_operand.vmem [shape: f32[1,32], index: 12, kind: input, shape index: {}]   ;;  %s2267_s13 = inlined_call_operand.hbm [shape: f32[16,32], index: 13, kind: output, shape index: {}]  }
   0x1   :  { %v1954_v0 = vld [vmem:[%s2254_s0] sm:$0xff]  ;;  %v1959_v1 = vld [vmem:[%s2254_s0 + $0x8] sm:$0xff] }
   0x2   :  { %v51_v2 = vsel %vm50_vm0, %v1954_v0, 0.0  ;;  %v54_v3 = vsel %vm50_vm0, %v1959_v1, 0.0 }
   0x3   :  { %52 = vadd.xlane.f32.xlu0 %v51_v2 }
   0x7   :  { %55 = vadd.xlane.f32.xlu0 %v54_v3 }
   0x8   :  { %18 = vsyncpa [#allocation3], 0  ;;  %v1785_v14 = vld [vmem:[%s2257_s3] sm:$0xff]   ;;  %v1865_v15 = vmov 0.0   ;;  %v1786_v16 = vld [vmem:[%s2257_s3 + $0x8] sm:$0xff]   ;;  %vm1866_vm1 = vmmov 0  }
   0x9   :  { %1613 = vmatprep.subr.bf16.mxu1 %v1865_v15  ;;  %1639 = vmatprep.subr.bf16.mxu0 %v1865_v15  ;;  %v1513_v25 = vld [vmem:[%s2255_s1] ss:$0 sm:$0xff]  ;;  %s1867_s1 = smov 96   ;;  %vm167_vm2 = vcmask 64512   ;;  %vm292_vm3 = vcmask 1043456   ;;  %s1870_s20 = smov 120  }
   0xa   :  { %1614 = vmatpush3.bf16.msra.mxu1 %v1785_v14  ;;  %1617 = vmatprep.mubr.msk.bf16.mxu1 %vm1866_vm1, %v1865_v15  ;;  %v1514_v29 = vld [vmem:[%s2256_s2] ss:$0 sm:$0xff]  ;;  %s1868_s2 = smov 64   ;;  %s1871_s21 = smov 56  }
   0xb   :  { %1615 = vmatprep.subr.bf16.mxu1 %v1865_v15  ;;  %1641 = vmatprep.mubr.msk.bf16.mxu0 %vm1866_vm1, %v1865_v15  ;;  %v1515_v34 = vld [vmem:[%s2258_s4] ss:$0 sm:$0xff]  ;;  %s1869_s4 = smov 88   ;;  %s1872_s22 = smov 80  }
   0xc   :  { %s1873_s23 = smov 112   ;;  %s1874_s28 = smov 48  }
   0xd   :  { %s1875_s0 = smov 72   ;;  %s1876_s29 = smov 104  }
   0xe   :  { %1616 = vmatpush3.bf16.msra.mxu1 %v1786_v16  ;;  %s1877_s3 = smov 40   ;;  %s1878_s17 = smov [#allocation2]  }
   0xf   :  { %1621 = vmatprep.subr.bf16.mxu1 %v1865_v15 }
  0x90   :  { %v53_v4 = vpop.xlane.xlu0 %52 }
  0x91   :  { %v58_v5 = vmul.f32 0.03125, %v53_v4 }
  0x93   :  { %v60_v6 = vsub.f32 %v1954_v0, %v58_v5 }
  0x94   :  { %v56_v7 = vpop.xlane.xlu0 %55 }
  0x95   :  { %v59_v8 = vmul.f32 0.03125, %v56_v7  ;;  %v62_v9 = vmul.f32 %v60_v6, %v60_v6 }
  0x97   :  { %v61_v10 = vsub.f32 %v1959_v1, %v59_v8  ;;  %v64_v11 = vsel %vm50_vm0, %v62_v9, 0.0 }
  0x98   :  { %65 = vadd.xlane.f32.xlu1 %v64_v11 }
  0x99   :  { %v63_v12 = vmul.f32 %v61_v10, %v61_v10 }
  0x9b   :  { %v67_v13 = vsel %vm50_vm0, %v63_v12, 0.0 }
  0x9c   :  { %68 = vadd.xlane.f32.xlu1 %v67_v13 }
 0x125   :  { %v66_v17 = vpop.xlane.xlu1 %65 }
 0x126   :  { %v70_v18 = vmul.f32 0.03125, %v66_v17 }
 0x128   :  { %v72_v19 = vadd.f32 1e-05, %v70_v18 }
 0x129   :  { %v69_v20 = vpop.xlane.xlu1 %68 }
 0x12a   :  { %1797 = vrsqrt.f32 %v72_v19  ;;  %v71_v21 = vmul.f32 0.03125, %v69_v20 }
 0x12c   :  { %v73_v22 = vadd.f32 1e-05, %v71_v21 }
 0x12e   :  { %1799 = vrsqrt.f32 %v73_v22 }
 0x134   :  { %v1798_v23 = vpop.eup %1797 }
 0x135   :  { %v76_v24 = vmul.f32 %v1798_v23, %v60_v6 }
 0x137   :  { %v84_v28 = vmul.f32 %v1513_v25, %v76_v24 }
 0x138   :  { %v1800_v26 = vpop.eup %1799 }
 0x139   :  { %v77_v27 = vmul.f32 %v1800_v26, %v61_v10  ;;  %v92_v31 = vadd.f32 %v1514_v29, %v84_v28 }
 0x13b   :  { %v85_v30 = vmul.f32 %v1513_v25, %v77_v27 }
 0x13d   :  { %v93_v32 = vadd.f32 %v1514_v29, %v85_v30 }
 0x13f   :  { %v94_v33 = vpack.c.bf16 %v93_v32, %v92_v31 }
 0x141   :  { %1618 = vmatmul.mubr.msk.bf16.vlgmr.msra.gmra.mrb[0].mxu1 %vm50_vm0, %v94_v33 }
 0x142   :  { %1623 = vmatprep.mubr.msk.bf16.mxu1 %vm1866_vm1, %v1865_v15 }
 0x214   :  { %v155_v35 = vpop.f32.mrb[0].mxu1 }
 0x215   :  { %v156_v36 = vadd.f32 %v1515_v34, %v155_v35  ;;  %v1619_v37 = vpop.f32.mrb[1].mxu1 }
 0x216   :  { %v158_v38 = vpop.f32.mrb[2].mxu1 }
 0x217   :  { %v1995_v39 = vpack.c.bf16 %v156_v36, %v156_v36  ;;  %v159_v40 = vadd.f32 %v1515_v34, %v158_v38  ;;  %v1620_v41 = vpop.f32.mrb[3].mxu1 }
 0x219   :  { %v1997_v42 = vpack.c.bf16 %v159_v40, %v159_v40  ;;  %165 = vrot.lane.b32.xlu0 %v1995_v39, %s1867_s1 }
 0x21b   :  { %215 = vrot.lane.b32.xlu1 %v1997_v42, %s1867_s1 }
 0x28b   :  { %v166_v43 = vpop.permute.xlu0 %165 }
 0x28c   :  { %v172_v44 = vsel %vm167_vm2, %v166_v43, 0 }
 0x28d   :  { %1622 = vmatpush3.bf16.xpose.msra.mxu1 %v172_v44  ;;  %v216_v45 = vpop.permute.xlu1 %215 }
 0x28e   :  { %1627 = vmatprep.subr.bf16.mxu1 %v1865_v15  ;;  %v221_v46 = vsel %vm167_vm2, %v216_v45, 0 }
 0x294   :  { %1624 = vmatmul.mubr.msk.bf16.vlgmr.msra.gmra.mrb[4].mxu1 %vm167_vm2, %v1995_v39 }
 0x295   :  { %1628 = vmatpush3.bf16.xpose.msra.mxu1 %v221_v46  ;;  %1629 = vmatprep.mubr.msk.bf16.mxu1 %vm1866_vm1, %v1865_v15 }
 0x296   :  { %1633 = vmatprep.subr.bf16.mxu1 %v1865_v15 }
 0x29c   :  { %1630 = vmatmul.mubr.msk.bf16.vlgmr.msra.gmra.mrb[8].mxu1 %vm167_vm2, %v1997_v42 }
 0x29d   :  { %1635 = vmatprep.mubr.msk.bf16.mxu1 %vm1866_vm1, %v1865_v15 }
 0x367   :  { %v208_v47 = vpop.f32.mrb[4].mxu1 }
 0x368   :  { %v1625_v48 = vpop.f32.mrb[5].mxu1  ;;  %v263_v49 = vsel %vm167_vm2, %v208_v47, -inf }
 0x369   :  { %264 = vmax.xlane.f32.xlu1 %v263_v49  ;;  %v211_v50 = vpop.f32.mrb[6].mxu1 }
 0x36a   :  { %v1626_v51 = vpop.f32.mrb[7].mxu1 }
 0x36f   :  { %v257_v52 = vpop.f32.mrb[8].mxu1 }
 0x370   :  { %v1631_v53 = vpop.f32.mrb[9].mxu1  ;;  %v266_v54 = vsel %vm167_vm2, %v257_v52, -inf }
 0x371   :  { %267 = vmax.xlane.f32.xlu0 %v266_v54  ;;  %v260_v55 = vpop.f32.mrb[10].mxu1 }
 0x372   :  { %v1632_v56 = vpop.f32.mrb[11].mxu1 }
 0x37a   :  { %336 = vrot.lane.b32.xlu1 %v1997_v42, %s1868_s2 }
 0x37e   :  { %388 = vrot.lane.b32.xlu1 %v1995_v39, %s1869_s4 }
 0x3f6   :  { %v265_v57 = vpop.xlane.xlu1 %264 }
 0x3f7   :  { %v269_v58 = vsub.f32 %v208_v47, %v265_v57 }
 0x3f9   :  { %v271_v59 = vmul.f32 1.442695, %v269_v58 }
 0x3fa   :  { %v337_v60 = vpop.permute.xlu1 %336 }
 0x3fb   :  { %1801 = vpow2.f32 %v271_v59  ;;  %v342_v61 = vsel %vm292_vm3, %v337_v60, 0 }
 0x3fc   :  { %1640 = vmatpush3.bf16.msra.mxu0 %v342_v61 }
 0x3fd   :  { %1651 = vmatprep.subr.bf16.mxu0 %v1865_v15 }
 0x3fe   :  { %v268_v62 = vpop.xlane.xlu0 %267  ;;  %v389_v8 = vpop.permute.xlu1 %388 }
 0x3ff   :  { %v270_v63 = vsub.f32 %v257_v52, %v268_v62  ;;  %v394_v16 = vsel %vm167_vm2, %v389_v8, 0 }
 0x401   :  { %v273_v2 = vmul.f32 1.442695, %v270_v63 }
 0x403   :  { %1803 = vpow2.f32 %v273_v2 }
 0x405   :  { %v1802_v3 = vpop.eup %1801 }
 0x406   :  { %v275_v4 = vsel %vm167_vm2, %v1802_v3, 0.0 }
 0x407   :  { %276 = vadd.xlane.f32.xlu0 %v275_v4 }
 0x40d   :  { %v1804_v5 = vpop.eup %1803 }
 0x40e   :  { %v278_v6 = vsel %vm167_vm2, %v1804_v5, 0.0 }
 0x40f   :  { %279 = vadd.xlane.f32.xlu1 %v278_v6 }
 0x41d   :  { %287 = vrot.lane.b32.xlu0 %v1995_v39, %s1868_s2 }
 0x420   :  { %438 = vrot.lane.b32.xlu1 %v1997_v42, %s1869_s4 }
 0x421   :  { %386 = vrot.lane.b32.xlu0 %v1995_v39, %s1870_s20 }
 0x424   :  { %436 = vrot.lane.b32.xlu1 %v1997_v42, %s1870_s20 }
 0x494   :  { %v277_v7 = vpop.xlane.xlu0 %276 }
 0x495   :  { %1805 = vrcp.f32 %v277_v7 }
 0x498   :  { %v288_v9 = vpop.permute.xlu0 %287 }
 0x499   :  { %v294_v10 = vsel %vm292_vm3, %v288_v9, 0 }
 0x49a   :  { %1634 = vmatpush3.bf16.msra.mxu1 %v294_v10 }
 0x49b   :  { %1645 = vmatprep.subr.bf16.mxu1 %v1865_v15 }
 0x49c   :  { %v280_v11 = vpop.xlane.xlu1 %279  ;;  %v387_v21 = vpop.permute.xlu0 %386 }
 0x49d   :  { %1807 = vrcp.f32 %v280_v11  ;;  %v1527_v11 = vld [vmem:[%s2259_s5 + $0x4] sm:$0xf] }
 0x49f   :  { %v1806_v12 = vpop.eup %1805 }
 0x4a0   :  { %v283_v13 = vmul.f32 %v1806_v12, %v1802_v3  ;;  %v439_v19 = vpop.permute.xlu1 %438  ;;  %v385_v3 = vld [vmem:[%s2259_s5] sm:$0xf]  ;;  %v613_v12 = vsel %vm292_vm3, %v1527_v11, 0 }
 0x4a1   :  { %v444_v22 = vsel %vm167_vm2, %v439_v19, 0  ;;  %v660_v6 = vsel %vm292_vm3, %v385_v3, 0 }
 0x4a2   :  { %v285_v14 = vpack.c.bf16 %v283_v13, %v283_v13 }
 0x4a4   :  { %1636 = vmatmul.mubr.msk.bf16.vlgmr.msra.gmra.mrb[12].mxu1 %vm167_vm2, %v285_v14  ;;  %v437_v23 = vpop.permute.xlu1 %436 }
 0x4a5   :  { %1646 = vmatpush3.bf16.xpose.msra.mxu1 %v394_v16  ;;  %1647 = vmatprep.mubr.msk.bf16.mxu1 %vm1866_vm1, %v1865_v15 }
 0x4a6   :  { %1657 = vmatprep.subr.bf16.mxu1 %v1865_v15 }
 0x4a7   :  { %v1808_v17 = vpop.eup %1807 }
 0x4a8   :  { %v284_v18 = vmul.f32 %v1808_v17, %v1804_v5 }
 0x4aa   :  { %v286_v20 = vpack.c.bf16 %v284_v18, %v284_v18 }
 0x4ac   :  { %1642 = vmatmul.mubr.msk.bf16.vlgmr.msra.gmra.mrb[0].mxu0 %vm167_vm2, %v286_v20  ;;  %1648 = vmatmul.mubr.msk.bf16.vlgmr.msra.gmra.mrb[16].mxu1 %vm167_vm2, %v387_v21 }
 0x4ad   :  { %1652 = vmatpush3.bf16.xpose.msra.mxu0 %v444_v22  ;;  %1653 = vmatprep.mubr.msk.bf16.mxu0 %vm1866_vm1, %v1865_v15 }
 0x4ae   :  { %1663 = vmatprep.subr.bf16.mxu0 %v1865_v15  ;;  %1659 = vmatprep.mubr.msk.bf16.mxu1 %vm1866_vm1, %v1865_v15 }
 0x4b4   :  { %1654 = vmatmul.mubr.msk.bf16.vlgmr.msra.gmra.mrb[4].mxu0 %vm167_vm2, %v437_v23 }
 0x4b5   :  { %1665 = vmatprep.mubr.msk.bf16.mxu0 %vm1866_vm1, %v1865_v15 }
 0x577   :  { %v2043_v24 = vpop.f32.mrb[12].mxu1 }
 0x578   :  { %v1637_v25 = vpop.f32.mrb[13].mxu1 }
 0x579   :  { %v333_v26 = vpop.f32.mrb[14].mxu1 }
 0x57a   :  { %v1638_v27 = vpop.f32.mrb[15].mxu1 }
 0x57f   :  { %v2045_v28 = vpop.f32.mrb[0].mxu0  ;;  %v430_v29 = vpop.f32.mrb[16].mxu1 }
 0x580   :  { %v384_v30 = vpack.c.bf16 %v2045_v28, %v2043_v24  ;;  %v1643_v31 = vpop.f32.mrb[1].mxu0  ;;  %v1649_v32 = vpop.f32.mrb[17].mxu1  ;;  %v486_v33 = vsel %vm167_vm2, %v430_v29, -inf }
 0x581   :  { %v381_v34 = vpop.f32.mrb[2].mxu0  ;;  %487 = vmax.xlane.f32.xlu0 %v486_v33  ;;  %v433_v35 = vpop.f32.mrb[18].mxu1 }
 0x582   :  { %v1644_v36 = vpop.f32.mrb[3].mxu0  ;;  %v1650_v37 = vpop.f32.mrb[19].mxu1 }
 0x587   :  { %v480_v38 = vpop.f32.mrb[4].mxu0 }
 0x588   :  { %v1655_v40 = vpop.f32.mrb[5].mxu0  ;;  %v489_v41 = vsel %vm167_vm2, %v480_v38, -inf }
 0x589   :  { %490 = vmax.xlane.f32.xlu1 %v489_v41  ;;  %v483_v43 = vpop.f32.mrb[6].mxu0 }
 0x58a   :  { %v1656_v44 = vpop.f32.mrb[7].mxu0 }
 0x59a   :  { %558 = vrot.lane.b32.xlu1 %v1997_v42, %s1871_s21 }
 0x59e   :  { %705 = vrot.lane.b32.xlu1 %v1995_v39, %s1872_s22 }
 0x5a2   :  { %755 = vrot.lane.b32.xlu1 %v1997_v42, %s1872_s22 }
 0x5a6   :  { %753 = vrot.lane.b32.xlu1 %v1997_v42, %s1873_s23 }
 0x60e   :  { %v488_v45 = vpop.xlane.xlu0 %487 }
 0x60f   :  { %v492_v46 = vsub.f32 %v430_v29, %v488_v45 }
 0x611   :  { %v494_v47 = vmul.f32 1.442695, %v492_v46 }
 0x613   :  { %1809 = vpow2.f32 %v494_v47 }
 0x616   :  { %v491_v48 = vpop.xlane.xlu1 %490 }
 0x617   :  { %v493_v49 = vsub.f32 %v480_v38, %v491_v48 }
 0x619   :  { %v496_v50 = vmul.f32 1.442695, %v493_v49 }
 0x61a   :  { %v559_v51 = vpop.permute.xlu1 %558 }
 0x61b   :  { %1811 = vpow2.f32 %v496_v50  ;;  %v564_v52 = vsel %vm292_vm3, %v559_v51, 0 }
 0x61c   :  { %1664 = vmatpush3.bf16.msra.mxu0 %v564_v52 }
 0x61d   :  { %v1810_v53 = vpop.eup %1809  ;;  %1675 = vmatprep.subr.bf16.mxu0 %v1865_v15 }
 0x61e   :  { %v498_v54 = vsel %vm167_vm2, %v1810_v53, 0.0  ;;  %v706_v7 = vpop.permute.xlu1 %705 }
 0x61f   :  { %499 = vadd.xlane.f32.xlu0 %v498_v54  ;;  %v711_v22 = vsel %vm167_vm2, %v706_v7, 0 }
 0x622   :  { %v756_v8 = vpop.permute.xlu1 %755 }
 0x623   :  { %v761_v9 = vsel %vm167_vm2, %v756_v8, 0 }
 0x625   :  { %v1812_v55 = vpop.eup %1811 }
 0x626   :  { %v501_v56 = vsel %vm167_vm2, %v1812_v55, 0.0  ;;  %v754_v10 = vpop.permute.xlu1 %753 }
 0x627   :  { %502 = vadd.xlane.f32.xlu0 %v501_v56 }
 0x63d   :  { %510 = vrot.lane.b32.xlu0 %v1995_v39, %s1871_s21 }
 0x641   :  { %703 = vrot.lane.b32.xlu0 %v1995_v39, %s1873_s23 }
 0x6ac   :  { %v500_v57 = vpop.xlane.xlu0 %499 }
 0x6ad   :  { %1813 = vrcp.f32 %v500_v57 }
 0x6b4   :  { %v503_v58 = vpop.xlane.xlu0 %502 }
 0x6b5   :  { %1815 = vrcp.f32 %v503_v58 }
 0x6b7   :  { %v1814_v59 = vpop.eup %1813 }
 0x6b8   :  { %v506_v60 = vmul.f32 %v1814_v59, %v1810_v53  ;;  %v511_v61 = vpop.permute.xlu0 %510 }
 0x6b9   :  { %v516_v62 = vsel %vm292_vm3, %v511_v61, 0 }
 0x6ba   :  { %1658 = vmatpush3.bf16.msra.mxu1 %v516_v62  ;;  %v508_v63 = vpack.c.bf16 %v506_v60, %v506_v60 }
 0x6bb   :  { %1669 = vmatprep.subr.bf16.mxu1 %v1865_v15 }
 0x6bc   :  { %v704_v26 = vpop.permute.xlu0 %703 }
 0x6bd   :  { %1660 = vmatmul.mubr.msk.bf16.vlgmr.msra.gmra.mrb[20].mxu1 %vm167_vm2, %v508_v63 }
 0x6be   :  { %1671 = vmatprep.mubr.msk.bf16.mxu1 %vm1866_vm1, %v1865_v15  ;;  %1670 = vmatpush3.bf16.msra.mxu1 %v613_v12 }
 0x6bf   :  { %v1816_v2 = vpop.eup %1815  ;;  %1681 = vmatprep.subr.bf16.mxu1 %v1865_v15 }
 0x6c0   :  { %v507_v4 = vmul.f32 %v1816_v2, %v1812_v55 }
 0x6c2   :  { %v509_v5 = vpack.c.bf16 %v507_v4, %v507_v4 }
 0x6c4   :  { %1666 = vmatmul.mubr.msk.bf16.vlgmr.msra.gmra.mrb[8].mxu0 %vm167_vm2, %v509_v5 }
 0x6c5   :  { %1676 = vmatpush3.bf16.msra.mxu0 %v660_v6  ;;  %1677 = vmatprep.mubr.msk.bf16.mxu0 %vm1866_vm1, %v1865_v15 }
 0x6c6   :  { %1687 = vmatprep.subr.bf16.mxu0 %v1865_v15 }
 0x6cc   :  { %1678 = vmatmul.mubr.msk.bf16.vlgmr.msra.gmra.mrb[12].mxu0 %vm167_vm2, %v384_v30 }
 0x6cd   :  { %1689 = vmatprep.mubr.msk.bf16.mxu0 %vm1866_vm1, %v1865_v15 }
 0x6ce   :  { %1688 = vmatpush3.bf16.xpose.msra.mxu0 %v761_v9 }
 0x6cf   :  { %1699 = vmatprep.subr.bf16.mxu0 %v1865_v15 }
 0x6d5   :  { %1690 = vmatmul.mubr.msk.bf16.vlgmr.msra.gmra.mrb[16].mxu0 %vm167_vm2, %v754_v10 }
 0x6d6   :  { %1701 = vmatprep.mubr.msk.bf16.mxu0 %vm1866_vm1, %v1865_v15 }
 0x790   :  { %v552_v13 = vpop.f32.mrb[20].mxu1 }
 0x791   :  { %v1661_v14 = vpop.f32.mrb[21].mxu1 }
 0x792   :  { %v555_v16 = vpop.f32.mrb[22].mxu1  ;;  %v1534_v14 = vld [vmem:[%s2259_s5 + $0x8] sm:$0xf] }
 0x793   :  { %v1662_v17 = vpop.f32.mrb[23].mxu1  ;;  %v930_v16 = vsel %vm292_vm3, %v1534_v14, 0 }
 0x797   :  { %v600_v18 = vpop.f32.mrb[8].mxu0 }
 0x798   :  { %v606_v19 = vpack.c.bf16 %v600_v18, %v552_v13  ;;  %v1667_v20 = vpop.f32.mrb[9].mxu0 }
 0x799   :  { %v603_v21 = vpop.f32.mrb[10].mxu0 }
 0x79a   :  { %v1668_v23 = vpop.f32.mrb[11].mxu0  ;;  %1672 = vmatmul.mubr.msk.bf16.vlgmr.msra.gmra.mrb[24].mxu1 %vm167_vm2, %v606_v19 }
 0x79b   :  { %1682 = vmatpush3.bf16.xpose.msra.mxu1 %v711_v22  ;;  %1683 = vmatprep.mubr.msk.bf16.mxu1 %vm1866_vm1, %v1865_v15 }
 0x79c   :  { %1693 = vmatprep.subr.bf16.mxu1 %v1865_v15 }
 0x79f   :  { %v696_v24 = vpop.f32.mrb[12].mxu0 }
 0x7a0   :  { %v1679_v25 = vpop.f32.mrb[13].mxu0 }
 0x7a1   :  { %v699_v27 = vpop.f32.mrb[14].mxu0 }
 0x7a2   :  { %v1680_v28 = vpop.f32.mrb[15].mxu0  ;;  %1684 = vmatmul.mubr.msk.bf16.vlgmr.msra.gmra.mrb[28].mxu1 %vm167_vm2, %v704_v26 }
 0x7a3   :  { %1695 = vmatprep.mubr.msk.bf16.mxu1 %vm1866_vm1, %v1865_v15 }
 0x7a8   :  { %v797_v29 = vpop.f32.mrb[16].mxu0 }
 0x7a9   :  { %v1691_v30 = vpop.f32.mrb[17].mxu0  ;;  %v806_v31 = vsel %vm167_vm2, %v797_v29, -inf }
 0x7aa   :  { %807 = vmax.xlane.f32.xlu1 %v806_v31  ;;  %v800_v32 = vpop.f32.mrb[18].mxu0 }
 0x7ab   :  { %v1692_v33 = vpop.f32.mrb[19].mxu0 }
 0x7bb   :  { %875 = vrot.lane.b32.xlu1 %v1997_v42, %s1874_s28 }
 0x7bf   :  { %977 = vrot.lane.b32.xlu1 %v1995_v39, %s1875_s0 }
 0x7c3   :  { %1027 = vrot.lane.b32.xlu1 %v1997_v42, %s1875_s0 }
 0x7c7   :  { %1025 = vrot.lane.b32.xlu1 %v1997_v42, %s1876_s29 }
 0x837   :  { %v808_v34 = vpop.xlane.xlu1 %807 }
 0x838   :  { %v810_v37 = vsub.f32 %v797_v29, %v808_v34 }
 0x83a   :  { %v813_v38 = vmul.f32 1.442695, %v810_v37 }
 0x83b   :  { %v876_v35 = vpop.permute.xlu1 %875 }
 0x83c   :  { %v881_v36 = vsel %vm292_vm3, %v876_v35, 0  ;;  %1817 = vpow2.f32 %v813_v38 }
 0x83d   :  { %1700 = vmatpush3.bf16.msra.mxu0 %v881_v36 }
 0x83e   :  { %1711 = vmatprep.subr.bf16.mxu0 %v1865_v15 }
 0x83f   :  { %v978_v62 = vpop.permute.xlu1 %977 }
 0x840   :  { %v983_v2 = vsel %vm167_vm2, %v978_v62, 0 }
 0x843   :  { %v1028_v22 = vpop.permute.xlu1 %1027 }
 0x846   :  { %v1818_v50 = vpop.eup %1817 }
 0x847   :  { %v818_v53 = vsel %vm167_vm2, %v1818_v50, 0.0  ;;  %v1026_v29 = vpop.permute.xlu1 %1025 }
 0x86d   :  { %v649_v40 = vpop.f32.mrb[24].mxu1 }
 0x86e   :  { %v2107_v41 = vadd.f32 %v696_v24, %v649_v40  ;;  %v1673_v43 = vpop.f32.mrb[25].mxu1 }
 0x86f   :  { %v652_v44 = vpop.f32.mrb[26].mxu1 }
 0x870   :  { %v2109_v45 = vadd.f32 %v699_v27, %v652_v44  ;;  %v1674_v46 = vpop.f32.mrb[27].mxu1  ;;  %v1033_v27 = vsel %vm167_vm2, %v1028_v22, 0 }
 0x875   :  { %v747_v47 = vpop.f32.mrb[28].mxu1 }
 0x876   :  { %v1685_v48 = vpop.f32.mrb[29].mxu1  ;;  %v803_v49 = vsel %vm167_vm2, %v747_v47, -inf }
 0x877   :  { %804 = vmax.xlane.f32.xlu0 %v803_v49  ;;  %v750_v51 = vpop.f32.mrb[30].mxu1 }
 0x878   :  { %v1686_v52 = vpop.f32.mrb[31].mxu1 }
 0x87b   :  { %819 = vadd.xlane.f32.xlu0 %v818_v53 }
 0x904   :  { %v805_v54 = vpop.xlane.xlu0 %804 }
 0x905   :  { %v809_v55 = vsub.f32 %v747_v47, %v805_v54 }
 0x907   :  { %v811_v56 = vmul.f32 1.442695, %v809_v55 }
 0x908   :  { %v820_v57 = vpop.xlane.xlu0 %819 }
 0x909   :  { %1819 = vpow2.f32 %v811_v56 }
 0x90a   :  { %1821 = vrcp.f32 %v820_v57 }
 0x913   :  { %v1820_v58 = vpop.eup %1819 }
 0x914   :  { %v1822_v59 = vpop.eup %1821  ;;  %v815_v60 = vsel %vm167_vm2, %v1820_v58, 0.0 }
 0x915   :  { %v824_v61 = vmul.f32 %v1822_v59, %v1818_v50  ;;  %816 = vadd.xlane.f32.xlu0 %v815_v60 }
 0x917   :  { %v826_v63 = vpack.c.bf16 %v824_v61, %v824_v61 }
 0x919   :  { %1702 = vmatmul.mubr.msk.bf16.vlgmr.msra.gmra.mrb[20].mxu0 %vm167_vm2, %v826_v63  ;;  %v1540_v63 = vld [vmem:[%s2259_s5 + $0xc] sm:$0xf] }
 0x91a   :  { %1712 = vmatpush3.bf16.xpose.msra.mxu0 %v983_v2  ;;  %1713 = vmatprep.mubr.msk.bf16.mxu0 %vm1866_vm1, %v1865_v15  ;;  %v1202_v2 = vsel %vm292_vm3, %v1540_v63, 0 }
 0x91b   :  { %1723 = vmatprep.subr.bf16.mxu0 %v1865_v15 }
 0x92b   :  { %827 = vrot.lane.b32.xlu0 %v1995_v39, %s1874_s28 }
 0x92f   :  { %975 = vrot.lane.b32.xlu0 %v1995_v39, %s1876_s29 }
 0x9a2   :  { %v817_v3 = vpop.xlane.xlu0 %816 }
 0x9a3   :  { %1823 = vrcp.f32 %v817_v3 }
 0x9a6   :  { %v828_v4 = vpop.permute.xlu0 %827 }
 0x9a7   :  { %v833_v5 = vsel %vm292_vm3, %v828_v4, 0 }
 0x9a8   :  { %1694 = vmatpush3.bf16.msra.mxu1 %v833_v5 }
 0x9a9   :  { %1705 = vmatprep.subr.bf16.mxu1 %v1865_v15 }
 0x9aa   :  { %v976_v6 = vpop.permute.xlu0 %975 }
 0x9ab   :  { %1714 = vmatmul.mubr.msk.bf16.vlgmr.msra.gmra.mrb[24].mxu0 %vm167_vm2, %v976_v6 }
 0x9ac   :  { %1725 = vmatprep.mubr.msk.bf16.mxu0 %vm1866_vm1, %v1865_v15 }
 0x9ad   :  { %v1824_v7 = vpop.eup %1823 }
 0x9ae   :  { %v823_v8 = vmul.f32 %v1824_v7, %v1820_v58 }
 0x9b0   :  { %v825_v9 = vpack.c.bf16 %v823_v8, %v823_v8 }
 0x9b2   :  { %1696 = vmatmul.mubr.msk.bf16.vlgmr.msra.gmra.mrb[32].mxu1 %vm167_vm2, %v825_v9 }
 0x9b3   :  { %1707 = vmatprep.mubr.msk.bf16.mxu1 %vm1866_vm1, %v1865_v15  ;;  %1706 = vmatpush3.bf16.msra.mxu1 %v930_v16  ;;  %v1542_v16 = vld [vmem:[%s2260_s6] ss:$0 sm:$0xff]  ;;  %s1502_s6 = sshll.u32 %s1878_s17, 4  ;;  %s1503_s6 = int_to_ptr.vmem [resolvable:$true] %s1502_s6 }
 0x9b4   :  { %1717 = vmatprep.subr.bf16.mxu1 %v1865_v15  ;;  %s1841_s18 = scalar_lea.vmem %s1503_s6, 256  ;;  %p1846_p1 = scmp.lt.s32.totalorder %s1503_s6, %s1503_s6 }
 0x9b5   :  { %p1842_p0 = scmp.ne.s32.totalorder %s1503_s6, %s1841_s18  ;;  %p1847_p2 = scmp.lt.s32.totalorder %s1841_s18, %s1841_s18 }
 0x9b7   :  { %p1848_p3 = por %p1847_p2, %p1846_p1 }
 0x9b9   :  { %p1849_p4 = pnand %p1848_p3, %p1842_p0 }
 0x9ec   :  { %v917_v10 = vpop.f32.mrb[20].mxu0 }
 0x9ed   :  { %v1703_v11 = vpop.f32.mrb[21].mxu0 }
 0x9ee   :  { %v920_v12 = vpop.f32.mrb[22].mxu0 }
 0x9ef   :  { %v1704_v13 = vpop.f32.mrb[23].mxu0 }
 0xa7e   :  { %v1019_v17 = vpop.f32.mrb[24].mxu0 }
 0xa7f   :  { %v1715_v18 = vpop.f32.mrb[25].mxu0  ;;  %v1075_v19 = vsel %vm167_vm2, %v1019_v17, -inf }
 0xa80   :  { %1076 = vmax.xlane.f32.xlu0 %v1075_v19  ;;  %v1022_v20 = vpop.f32.mrb[26].mxu0 }
 0xa81   :  { %v1716_v21 = vpop.f32.mrb[27].mxu0 }
 0xa85   :  { %v869_v23 = vpop.f32.mrb[32].mxu1 }
 0xa86   :  { %v923_v24 = vpack.c.bf16 %v917_v10, %v869_v23  ;;  %v1697_v25 = vpop.f32.mrb[33].mxu1 }
 0xa87   :  { %v872_v26 = vpop.f32.mrb[34].mxu1 }
 0xa88   :  { %v1698_v28 = vpop.f32.mrb[35].mxu1  ;;  %1708 = vmatmul.mubr.msk.bf16.vlgmr.msra.gmra.mrb[36].mxu1 %vm167_vm2, %v923_v24 }
 0xa89   :  { %1718 = vmatpush3.bf16.xpose.msra.mxu1 %v1033_v27  ;;  %1719 = vmatprep.mubr.msk.bf16.mxu1 %vm1866_vm1, %v1865_v15 }
 0xa8a   :  { %1729 = vmatprep.subr.bf16.mxu1 %v1865_v15 }
 0xa90   :  { %1720 = vmatmul.mubr.msk.bf16.vlgmr.msra.gmra.mrb[40].mxu1 %vm167_vm2, %v1026_v29 }
 0xa91   :  { %1731 = vmatprep.mubr.msk.bf16.mxu1 %vm1866_vm1, %v1865_v15 }
 0xb0d   :  { %v1077_v30 = vpop.xlane.xlu0 %1076 }
 0xb0e   :  { %v1081_v31 = vsub.f32 %v1019_v17, %v1077_v30 }
 0xb10   :  { %v1083_v32 = vmul.f32 1.442695, %v1081_v31 }
 0xb12   :  { %1825 = vpow2.f32 %v1083_v32 }
 0xb1c   :  { %v1826_v33 = vpop.eup %1825 }
 0xb1d   :  { %v1087_v34 = vsel %vm167_vm2, %v1826_v33, 0.0 }
 0xb1e   :  { %1088 = vadd.xlane.f32.xlu0 %v1087_v34  ;;  %v1787_v34 = vld [vmem:[%s2263_s9] sm:$0xff]  }
 0xb5b   :  { %v966_v35 = vpop.f32.mrb[36].mxu1 }
 0xb5c   :  { %v973_v36 = vadd.f32 %v966_v35, %v2107_v41  ;;  %v1709_v37 = vpop.f32.mrb[37].mxu1  ;;  %v1788_v35 = vld [vmem:[%s2263_s9 + $0x8] sm:$0xff]  }
 0xb5d   :  { %v969_v38 = vpop.f32.mrb[38].mxu1  ;;  %v1790_v37 = vld [vmem:[%s2265_s11 + $0x8] sm:$0xff]  }
 0xb5e   :  { %v974_v40 = vadd.f32 %v969_v38, %v2109_v45  ;;  %v1710_v43 = vpop.f32.mrb[39].mxu1 }
 0xb63   :  { %v1069_v44 = vpop.f32.mrb[40].mxu1 }
 0xb64   :  { %v1721_v46 = vpop.f32.mrb[41].mxu1  ;;  %v1078_v47 = vsel %vm167_vm2, %v1069_v44, -inf }
 0xb65   :  { %1079 = vmax.xlane.f32.xlu1 %v1078_v47  ;;  %v1072_v48 = vpop.f32.mrb[42].mxu1 }
 0xb66   :  { %v1722_v49 = vpop.f32.mrb[43].mxu1 }
 0xb67   :  { %v1543_v49 = vld [vmem:[%s2261_s7] ss:$0 sm:$0xff] }
 0xb76   :  { %1147 = vrot.lane.b32.xlu1 %v1997_v42, %s1877_s3 }
 0xbab   :  { %v1089_v55 = vpop.xlane.xlu0 %1088 }
 0xbf2   :  { %v1080_v50 = vpop.xlane.xlu1 %1079 }
 0xbf3   :  { %v1082_v51 = vsub.f32 %v1069_v44, %v1080_v50 }
 0xbf5   :  { %v1085_v52 = vmul.f32 1.442695, %v1082_v51 }
 0xbf6   :  { %v1148_v53 = vpop.permute.xlu1 %1147 }
 0xbf7   :  { %1827 = vpow2.f32 %v1085_v52  ;;  %v1153_v41 = vsel %vm292_vm3, %v1148_v53, 0 }
 0xbf8   :  { %1730 = vmatpush3.bf16.msra.mxu1 %v1153_v41  ;;  %1829 = vrcp.f32 %v1089_v55  ;;  %v1544_v41 = vld [vmem:[%s2262_s8] ss:$0 sm:$0xff] }
 0xbf9   :  { %1741 = vmatprep.subr.bf16.mxu1 %v1865_v15 }
 0xc01   :  { %v1828_v45 = vpop.eup %1827 }
 0xc02   :  { %v1090_v54 = vsel %vm167_vm2, %v1828_v45, 0.0  ;;  %v1830_v56 = vpop.eup %1829 }
 0xc03   :  { %1091 = vadd.xlane.f32.xlu0 %v1090_v54  ;;  %v1095_v57 = vmul.f32 %v1830_v56, %v1826_v33 }
 0xc05   :  { %v1097_v60 = vpack.c.bf16 %v1095_v57, %v1095_v57  ;;  %v1792_v57 = vld [vmem:[%s2265_s11 + $0x18] sm:$0xff]  }
 0xc19   :  { %1099 = vrot.lane.b32.xlu0 %v1995_v39, %s1877_s3 }
 0xc90   :  { %v1092_v42 = vpop.xlane.xlu0 %1091 }
 0xc91   :  { %1831 = vrcp.f32 %v1092_v42  ;;  %v1791_v42 = vld [vmem:[%s2265_s11 + $0x10] sm:$0xff]  }
 0xc94   :  { %v1100_v58 = vpop.permute.xlu0 %1099 }
 0xc95   :  { %v1105_v59 = vsel %vm292_vm3, %v1100_v58, 0  ;;  %v1793_v58 = vld [vmem:[%s2265_s11 + $0x20] sm:$0xff]  }
 0xc96   :  { %1724 = vmatpush3.bf16.msra.mxu0 %v1105_v59  ;;  %v1794_v59 = vld [vmem:[%s2265_s11 + $0x28] sm:$0xff]  }
 0xc97   :  { %1735 = vmatprep.subr.bf16.mxu0 %v1865_v15 }
 0xc99   :  { %1726 = vmatmul.mubr.msk.bf16.vlgmr.msra.gmra.mrb[28].mxu0 %vm167_vm2, %v1097_v60  ;;  %v1795_v60 = vld [vmem:[%s2265_s11 + $0x30] sm:$0xff]  }
 0xc9a   :  { %1737 = vmatprep.mubr.msk.bf16.mxu0 %vm1866_vm1, %v1865_v15  ;;  %1736 = vmatpush3.bf16.msra.mxu0 %v1202_v2 }
 0xc9b   :  { %v1832_v61 = vpop.eup %1831  ;;  %1749 = vmatprep.subr.bf16.mxu0 %v1865_v15 }
 0xc9c   :  { %v1096_v39 = vmul.f32 %v1832_v61, %v1828_v45  ;;  %v1796_v61 = vld [vmem:[%s2265_s11 + $0x38] sm:$0xff]  }
 0xc9e   :  { %v1098_v62 = vpack.c.bf16 %v1096_v39, %v1096_v39  ;;  %v1545_v39 = vld [vmem:[%s2264_s10] ss:$0 sm:$0xff] }
 0xca0   :  { %1732 = vmatmul.mubr.msk.bf16.vlgmr.msra.gmra.mrb[44].mxu1 %vm167_vm2, %v1098_v62 }
 0xca1   :  { %1745 = vmatprep.mubr.msk.bf16.mxu1 %vm1866_vm1, %v1865_v15  ;;  %1742 = vmatpush3.bf16.msra.mxu1 %v1787_v34 }
 0xca2   :  { %1743 = vmatprep.subr.bf16.mxu1 %v1865_v15 }
 0xca5   :  { %1744 = vmatpush3.bf16.msra.mxu1 %v1788_v35 }
 0xd6c   :  { %v1141_v3 = vpop.f32.mrb[28].mxu0 }
 0xd6d   :  { %v1727_v4 = vpop.f32.mrb[29].mxu0 }
 0xd6e   :  { %v1144_v5 = vpop.f32.mrb[30].mxu0 }
 0xd6f   :  { %v1728_v6 = vpop.f32.mrb[31].mxu0 }
 0xd73   :  { %v1189_v7 = vpop.f32.mrb[44].mxu1 }
 0xd74   :  { %v1195_v8 = vpack.c.bf16 %v1189_v7, %v1141_v3  ;;  %v1733_v9 = vpop.f32.mrb[45].mxu1 }
 0xd75   :  { %v1192_v10 = vpop.f32.mrb[46].mxu1 }
 0xd76   :  { %v1734_v11 = vpop.f32.mrb[47].mxu1  ;;  %1738 = vmatmul.mubr.msk.bf16.vlgmr.msra.gmra.mrb[32].mxu0 %vm167_vm2, %v1195_v8 }
 0xd77   :  { %1765 = vmatprep.mubr.msk.bf16.mxu0 %vm1866_vm1, %v1865_v15 }
 0xe49   :  { %v1238_v12 = vpop.f32.mrb[32].mxu0 }
 0xe4a   :  { %v1245_v13 = vadd.f32 %v1238_v12, %v973_v36  ;;  %v1739_v14 = vpop.f32.mrb[33].mxu0  ;;  %v1789_v36 = vld [vmem:[%s2265_s11] sm:$0xff]  }
 0xe4b   :  { %v1241_v17 = vpop.f32.mrb[34].mxu0  ;;  %1750 = vmatpush3.bf16.msra.mxu0 %v1789_v36 }
 0xe4c   :  { %v1247_v18 = vadd.f32 %v1245_v13, %v1954_v0  ;;  %v1246_v19 = vadd.f32 %v1241_v17, %v974_v40  ;;  %v1740_v20 = vpop.f32.mrb[35].mxu0  ;;  %1751 = vmatprep.subr.bf16.mxu0 %v1865_v15  ;;  %v1549_v17 = vld [vmem:[%s2266_s12] ss:$0 sm:$0xff] }
 0xe4e   :  { %v2174_v21 = vadd.f32 %v1542_v16, %v1247_v18  ;;  %v1248_v22 = vadd.f32 %v1246_v19, %v1959_v1 }
 0xe4f   :  { %1752 = vmatpush3.bf16.msra.mxu0 %v1790_v37 }
 0xe50   :  { %v2177_v23 = vadd.f32 %v1542_v16, %v1248_v22  ;;  %v1260_v24 = vsel %vm50_vm0, %v2174_v21, 0.0  ;;  %1753 = vmatprep.subr.bf16.mxu0 %v1865_v15 }
 0xe51   :  { %1261 = vadd.xlane.f32.xlu1 %v1260_v24 }
 0xe52   :  { %v1263_v25 = vsel %vm50_vm0, %v2177_v23, 0.0 }
 0xe53   :  { %1264 = vadd.xlane.f32.xlu0 %v1263_v25  ;;  %1754 = vmatpush3.bf16.msra.mxu0 %v1791_v42 }
 0xe54   :  { %1755 = vmatprep.subr.bf16.mxu0 %v1865_v15 }
 0xe57   :  { %1756 = vmatpush3.bf16.msra.mxu0 %v1792_v57 }
 0xe58   :  { %1757 = vmatprep.subr.bf16.mxu0 %v1865_v15 }
 0xe5b   :  { %1758 = vmatpush3.bf16.msra.mxu0 %v1793_v58 }
 0xe5c   :  { %1759 = vmatprep.subr.bf16.mxu0 %v1865_v15 }
 0xe5f   :  { %1760 = vmatpush3.bf16.msra.mxu0 %v1794_v59 }
 0xe60   :  { %1761 = vmatprep.subr.bf16.mxu0 %v1865_v15 }
 0xe63   :  { %1762 = vmatpush3.bf16.msra.mxu0 %v1795_v60 }
 0xe64   :  { %1763 = vmatprep.subr.bf16.mxu0 %v1865_v15 }
 0xe67   :  { %1764 = vmatpush3.bf16.msra.mxu0 %v1796_v61 }
 0xede   :  { %v1262_v26 = vpop.xlane.xlu1 %1261 }
 0xedf   :  { %v1266_v27 = vmul.f32 0.03125, %v1262_v26 }
 0xee0   :  { %v1265_v28 = vpop.xlane.xlu0 %1264 }
 0xee1   :  { %v1268_v0 = vsub.f32 %v2174_v21, %v1266_v27  ;;  %v1267_v29 = vmul.f32 0.03125, %v1265_v28 }
 0xee3   :  { %v1269_v30 = vsub.f32 %v2177_v23, %v1267_v29  ;;  %v1270_v31 = vmul.f32 %v1268_v0, %v1268_v0 }
 0xee5   :  { %v1272_v1 = vsel %vm50_vm0, %v1270_v31, 0.0  ;;  %v1271_v32 = vmul.f32 %v1269_v30, %v1269_v30 }
 0xee6   :  { %1273 = vadd.xlane.f32.xlu0 %v1272_v1 }
 0xee7   :  { %v1275_v33 = vsel %vm50_vm0, %v1271_v32, 0.0 }
 0xee8   :  { %1276 = vadd.xlane.f32.xlu1 %v1275_v33 }
 0xf73   :  { %v1274_v38 = vpop.xlane.xlu0 %1273 }
 0xf74   :  { %v1278_v40 = vmul.f32 0.03125, %v1274_v38 }
 0xf75   :  { %v1277_v43 = vpop.xlane.xlu1 %1276 }
 0xf76   :  { %v1280_v44 = vadd.f32 1e-05, %v1278_v40  ;;  %v1279_v46 = vmul.f32 0.03125, %v1277_v43 }
 0xf78   :  { %1833 = vrsqrt.f32 %v1280_v44  ;;  %v1281_v47 = vadd.f32 1e-05, %v1279_v46 }
 0xf7a   :  { %1835 = vrsqrt.f32 %v1281_v47 }
 0xf82   :  { %v1834_v48 = vpop.eup %1833 }
 0xf83   :  { %v1284_v50 = vmul.f32 %v1834_v48, %v1268_v0 }
 0xf84   :  { %v1836_v51 = vpop.eup %1835 }
 0xf85   :  { %v1292_v52 = vmul.f32 %v1543_v49, %v1284_v50  ;;  %v1285_v53 = vmul.f32 %v1836_v51, %v1269_v30 }
 0xf87   :  { %v1293_v45 = vmul.f32 %v1543_v49, %v1285_v53  ;;  %v1300_v54 = vadd.f32 %v1544_v41, %v1292_v52 }
 0xf89   :  { %v1301_v55 = vadd.f32 %v1544_v41, %v1293_v45 }
 0xf8b   :  { %v1302_v56 = vpack.c.bf16 %v1301_v55, %v1300_v54 }
 0xf8d   :  { %1746 = vmatmul.mubr.msk.bf16.vlgmr.msra.gmra.mrb[48].mxu1 %vm50_vm0, %v1302_v56 }
0x1060   :  { %v1363_v62 = vpop.f32.mrb[48].mxu1 }
0x1061   :  { %v1364_v63 = vadd.f32 %v1545_v39, %v1363_v62  ;;  %v1747_v2 = vpop.f32.mrb[49].mxu1 }
0x1062   :  { %v1366_v3 = vpop.f32.mrb[50].mxu1 }
0x1063   :  { %v1372_v4 = vmul.f32 0.70710677, %v1364_v63  ;;  %v1367_v5 = vadd.f32 %v1545_v39, %v1366_v3  ;;  %v1748_v6 = vpop.f32.mrb[51].mxu1  ;;  %v1370_v10 = vmul.f32 0.5, %v1364_v63 }
0x1065   :  { %1837 = verf.f32 %v1372_v4  ;;  %v1373_v7 = vmul.f32 0.70710677, %v1367_v5  ;;  %v1371_v11 = vmul.f32 0.5, %v1367_v5 }
0x1067   :  { %1839 = verf.f32 %v1373_v7 }
0x106f   :  { %v1838_v15 = vpop.eup %1837 }
0x1070   :  { %v1376_v8 = vadd.f32 1.0, %v1838_v15 }
0x1071   :  { %v1840_v9 = vpop.eup %1839 }
0x1072   :  { %v1377_v12 = vadd.f32 1.0, %v1840_v9  ;;  %v1378_v13 = vmul.f32 %v1376_v8, %v1370_v10 }
0x1074   :  { %v1379_v14 = vmul.f32 %v1377_v12, %v1371_v11 }
0x1076   :  { %v1380_v16 = vpack.c.bf16 %v1379_v14, %v1378_v13 }
0x1078   :  { %1766 = vmatmul.mubr.bf16.vlgmr.msra.gmra.mrb[36].mxu0 %v1380_v16 }
0x114b   :  { %v1486_v18 = vpop.f32.mrb[36].mxu0 }
0x114c   :  { %v1487_v19 = vadd.f32 %v1549_v17, %v1486_v18  ;;  %v1767_v20 = vpop.f32.mrb[37].mxu0 }
0x114d   :  { %v1489_v22 = vpop.f32.mrb[38].mxu0 }
0x114e   :  { %v1493_v24 = vadd.f32 %v1487_v19, %v2174_v21  ;;  %v1490_v25 = vadd.f32 %v1549_v17, %v1489_v22  ;;  %v1768_v26 = vpop.f32.mrb[39].mxu0 }
0x1150   :  { %1495 = vst.msk [vmem:[#allocation2] sm:$0xff] %vm50_vm0, %v1493_v24  ;;  %v1494_v27 = vadd.f32 %v1490_v25, %v2177_v23 }
0x1152   :  { %1496 = vst.msk [vmem:[#allocation2 + $0x8] sm:$0xff] %vm50_vm0, %v1494_v27 }
0x1153   :  { %1852 = shalt.err (!%p1849_p4)
}
0x1154   :  { %s1853_s1 = scalar_lea.hbm %s2267_s13, 256 }
0x1155   :  { %p1854_p5 = scmp.ne.s32.totalorder %s2267_s13, %s1853_s1  ;;  %p1857_p6 = scmp.lt.u32.totalorder %s1853_s1, %s2267_s13 }
0x1157   :  { %p1859_p7 = pnand %p1857_p6, %p1854_p5 }
0x1159   :  { %1862 = shalt.err (!%p1859_p7)
}
0x115a   :  { %s1879_s9 = smov 128   ;;  %s1880_s22 = smov 8  }
0x115b   :  { %1508 = dma.vmem_to_hbm [thread:$0]  %s1503_s6, 256, %s2267_s13, [#allocation3], %s1879_s9, %s1879_s9, %s1880_s22  }
0x115c   :  { %1863 = dma.done.wait [#allocation3], 256  }
0x115d   :  { %1864 = vsyncadd [#allocation3], 4294967040 }
0x115e   :  { %1512 = vsyncpa [#allocation3], 1 }

// kernel: tpu_custom_call.1
= control target key start
LH: loop header
LB: loop body
LE: loop exit
PB: predicated region body
PF: predicated region fallthrough
CT: control target
= control target key end

     0   :  { %vm50_vm0 = vcmask 261120   ;;  %s2254_s0 = inlined_call_operand.vmem [shape: f32[16,32], index: 0, kind: input, shape index: {}]   ;;  %s2255_s1 = inlined_call_operand.vmem [shape: f32[1,32], index: 1, kind: input, shape index: {}]   ;;  %s2256_s2 = inlined_call_operand.vmem [shape: f32[1,32], index: 2, kind: input, shape index: {}]   ;;  %s2257_s3 = inlined_call_operand.vmem [shape: bf16[32,96], index: 3, kind: input, shape index: {}]   ;;  %s2258_s4 = inlined_call_operand.vmem [shape: f32[1,96], index: 4, kind: input, shape index: {}]   ;;  %s2259_s5 = inlined_call_operand.vmem [shape: bf16[4,8,32], index: 5, kind: input, shape index: {}]   ;;  %s2260_s6 = inlined_call_operand.vmem [shape: f32[1,32], index: 6, kind: input, shape index: {}]   ;;  %s2261_s7 = inlined_call_operand.vmem [shape: f32[1,32], index: 7, kind: input, shape index: {}]   ;;  %s2262_s8 = inlined_call_operand.vmem [shape: f32[1,32], index: 8, kind: input, shape index: {}]   ;;  %s2263_s9 = inlined_call_operand.vmem [shape: bf16[32,128], index: 9, kind: input, shape index: {}]   ;;  %s2264_s10 = inlined_call_operand.vmem [shape: f32[1,128], index: 10, kind: input, shape index: {}]   ;;  %s2265_s11 = inlined_call_operand.vmem [shape: bf16[128,32], index: 11, kind: input, shape index: {}]   ;;  %s2266_s12 = inlined_call_operand.vmem [shape: f32[1,32], index: 12, kind: input, shape index: {}]   ;;  %s2267_s13 = inlined_call_operand.hbm [shape: f32[16,32], index: 13, kind: output, shape index: {}]  }
   0x1   :  { %v1954_v0 = vld [vmem:[%s2254_s0] sm:$0xff]  ;;  %v1959_v1 = vld [vmem:[%s2254_s0 + $0x8] sm:$0xff] }
   0x2   :  { %v51_v2 = vsel %vm50_vm0, %v1954_v0, 0.0  ;;  %v54_v3 = vsel %vm50_vm0, %v1959_v1, 0.0 }
   0x3   :  { %52 = vadd.xlane.f32.xlu0 %v51_v2 }
   0x7   :  { %55 = vadd.xlane.f32.xlu0 %v54_v3 }
   0x8   :  { %18 = vsyncpa [#allocation3], 0  ;;  %v1785_v14 = vld [vmem:[%s2257_s3] sm:$0xff]   ;;  %v1865_v15 = vmov 0.0   ;;  %v1786_v16 = vld [vmem:[%s2257_s3 + $0x8] sm:$0xff]   ;;  %vm1866_vm1 = vmmov 0  }
   0x9   :  { %1613 = vmatprep.subr.bf16.mxu1 %v1865_v15  ;;  %1639 = vmatprep.subr.bf16.mxu0 %v1865_v15  ;;  %v1513_v25 = vld [vmem:[%s2255_s1] ss:$0 sm:$0xff]  ;;  %s1867_s1 = smov 96   ;;  %vm167_vm2 = vcmask 64512   ;;  %vm292_vm3 = vcmask 1043456   ;;  %s1870_s20 = smov 120  }
   0xa   :  { %1614 = vmatpush3.bf16.msra.mxu1 %v1785_v14  ;;  %1617 = vmatprep.mubr.msk.bf16.mxu1 %vm1866_vm1, %v1865_v15  ;;  %v1514_v29 = vld [vmem:[%s2256_s2] ss:$0 sm:$0xff]  ;;  %s1868_s2 = smov 64   ;;  %s1871_s21 = smov 56  }
   0xb   :  { %1615 = vmatprep.subr.bf16.mxu1 %v1865_v15  ;;  %1641 = vmatprep.mubr.msk.bf16.mxu0 %vm1866_vm1, %v1865_v15  ;;  %v1515_v34 = vld [vmem:[%s2258_s4] ss:$0 sm:$0xff]  ;;  %s1869_s4 = smov 88   ;;  %s1872_s22 = smov 80  }
   0xc   :  { %s1873_s23 = smov 112   ;;  %s1874_s28 = smov 48  }
   0xd   :  { %s1875_s0 = smov 72   ;;  %s1876_s29 = smov 104  }
   0xe   :  { %1616 = vmatpush3.bf16.msra.mxu1 %v1786_v16  ;;  %s1877_s3 = smov 40   ;;  %s1878_s17 = smov [#allocation2]  }
   0xf   :  { %1621 = vmatprep.subr.bf16.mxu1 %v1865_v15 }
  0x90   :  { %v53_v4 = vpop.xlane.xlu0 %52 }
  0x91   :  { %v58_v5 = vmul.f32 0.03125, %v53_v4 }
  0x93   :  { %v60_v6 = vsub.f32 %v1954_v0, %v58_v5 }
  0x94   :  { %v56_v7 = vpop.xlane.xlu0 %55 }
  0x95   :  { %v59_v8 = vmul.f32 0.03125, %v56_v7  ;;  %v62_v9 = vmul.f32 %v60_v6, %v60_v6 }
  0x97   :  { %v61_v10 = vsub.f32 %v1959_v1, %v59_v8  ;;  %v64_v11 = vsel %vm50_vm0, %v62_v9, 0.0 }
  0x98   :  { %65 = vadd.xlane.f32.xlu1 %v64_v11 }
  0x99   :  { %v63_v12 = vmul.f32 %v61_v10, %v61_v10 }
  0x9b   :  { %v67_v13 = vsel %vm50_vm0, %v63_v12, 0.0 }
  0x9c   :  { %68 = vadd.xlane.f32.xlu1 %v67_v13 }
 0x125   :  { %v66_v17 = vpop.xlane.xlu1 %65 }
 0x126   :  { %v70_v18 = vmul.f32 0.03125, %v66_v17 }
 0x128   :  { %v72_v19 = vadd.f32 1e-05, %v70_v18 }
 0x129   :  { %v69_v20 = vpop.xlane.xlu1 %68 }
 0x12a   :  { %1797 = vrsqrt.f32 %v72_v19  ;;  %v71_v21 = vmul.f32 0.03125, %v69_v20 }
 0x12c   :  { %v73_v22 = vadd.f32 1e-05, %v71_v21 }
 0x12e   :  { %1799 = vrsqrt.f32 %v73_v22 }
 0x134   :  { %v1798_v23 = vpop.eup %1797 }
 0x135   :  { %v76_v24 = vmul.f32 %v1798_v23, %v60_v6 }
 0x137   :  { %v84_v28 = vmul.f32 %v1513_v25, %v76_v24 }
 0x138   :  { %v1800_v26 = vpop.eup %1799 }
 0x139   :  { %v77_v27 = vmul.f32 %v1800_v26, %v61_v10  ;;  %v92_v31 = vadd.f32 %v1514_v29, %v84_v28 }
 0x13b   :  { %v85_v30 = vmul.f32 %v1513_v25, %v77_v27 }
 0x13d   :  { %v93_v32 = vadd.f32 %v1514_v29, %v85_v30 }
 0x13f   :  { %v94_v33 = vpack.c.bf16 %v93_v32, %v92_v31 }
 0x141   :  { %1618 = vmatmul.mubr.msk.bf16.vlgmr.msra.gmra.mrb[0].mxu1 %vm50_vm0, %v94_v33 }
 0x142   :  { %1623 = vmatprep.mubr.msk.bf16.mxu1 %vm1866_vm1, %v1865_v15 }
 0x214   :  { %v155_v35 = vpop.f32.mrb[0].mxu1 }
 0x215   :  { %v156_v36 = vadd.f32 %v1515_v34, %v155_v35  ;;  %v1619_v37 = vpop.f32.mrb[1].mxu1 }
 0x216   :  { %v158_v38 = vpop.f32.mrb[2].mxu1 }
 0x217   :  { %v1995_v39 = vpack.c.bf16 %v156_v36, %v156_v36  ;;  %v159_v40 = vadd.f32 %v1515_v34, %v158_v38  ;;  %v1620_v41 = vpop.f32.mrb[3].mxu1 }
 0x219   :  { %v1997_v42 = vpack.c.bf16 %v159_v40, %v159_v40  ;;  %165 = vrot.lane.b32.xlu0 %v1995_v39, %s1867_s1 }
 0x21b   :  { %215 = vrot.lane.b32.xlu1 %v1997_v42, %s1867_s1 }
 0x28b   :  { %v166_v43 = vpop.permute.xlu0 %165 }
 0x28c   :  { %v172_v44 = vsel %vm167_vm2, %v166_v43, 0 }
 0x28d   :  { %1622 = vmatpush3.bf16.xpose.msra.mxu1 %v172_v44  ;;  %v216_v45 = vpop.permute.xlu1 %215 }
 0x28e   :  { %1627 = vmatprep.subr.bf16.mxu1 %v1865_v15  ;;  %v221_v46 = vsel %vm167_vm2, %v216_v45, 0 }
 0x294   :  { %1624 = vmatmul.mubr.msk.bf16.vlgmr.msra.gmra.mrb[4].mxu1 %vm167_vm2, %v1995_v39 }
 0x295   :  { %1628 = vmatpush3.bf16.xpose.msra.mxu1 %v221_v46  ;;  %1629 = vmatprep.mubr.msk.bf16.mxu1 %vm1866_vm1, %v1865_v15 }
 0x296   :  { %1633 = vmatprep.subr.bf16.mxu1 %v1865_v15 }
 0x29c   :  { %1630 = vmatmul.mubr.msk.bf16.vlgmr.msra.gmra.mrb[8].mxu1 %vm167_vm2, %v1997_v42 }
 0x29d   :  { %1635 = vmatprep.mubr.msk.bf16.mxu1 %vm1866_vm1, %v1865_v15 }
 0x367   :  { %v208_v47 = vpop.f32.mrb[4].mxu1 }
 0x368   :  { %v1625_v48 = vpop.f32.mrb[5].mxu1  ;;  %v263_v49 = vsel %vm167_vm2, %v208_v47, -inf }
 0x369   :  { %264 = vmax.xlane.f32.xlu1 %v263_v49  ;;  %v211_v50 = vpop.f32.mrb[6].mxu1 }
 0x36a   :  { %v1626_v51 = vpop.f32.mrb[7].mxu1 }
 0x36f   :  { %v257_v52 = vpop.f32.mrb[8].mxu1 }
 0x370   :  { %v1631_v53 = vpop.f32.mrb[9].mxu1  ;;  %v266_v54 = vsel %vm167_vm2, %v257_v52, -inf }
 0x371   :  { %267 = vmax.xlane.f32.xlu0 %v266_v54  ;;  %v260_v55 = vpop.f32.mrb[10].mxu1 }
 0x372   :  { %v1632_v56 = vpop.f32.mrb[11].mxu1 }
 0x37a   :  { %336 = vrot.lane.b32.xlu1 %v1997_v42, %s1868_s2 }
 0x37e   :  { %388 = vrot.lane.b32.xlu1 %v1995_v39, %s1869_s4 }
 0x3f6   :  { %v265_v57 = vpop.xlane.xlu1 %264 }
 0x3f7   :  { %v269_v58 = vsub.f32 %v208_v47, %v265_v57 }
 0x3f9   :  { %v271_v59 = vmul.f32 1.442695, %v269_v58 }
 0x3fa   :  { %v337_v60 = vpop.permute.xlu1 %336 }
 0x3fb   :  { %1801 = vpow2.f32 %v271_v59  ;;  %v342_v61 = vsel %vm292_vm3, %v337_v60, 0 }
 0x3fc   :  { %1640 = vmatpush3.bf16.msra.mxu0 %v342_v61 }
 0x3fd   :  { %1651 = vmatprep.subr.bf16.mxu0 %v1865_v15 }
 0x3fe   :  { %v268_v62 = vpop.xlane.xlu0 %267  ;;  %v389_v8 = vpop.permute.xlu1 %388 }
 0x3ff   :  { %v270_v63 = vsub.f32 %v257_v52, %v268_v62  ;;  %v394_v16 = vsel %vm167_vm2, %v389_v8, 0 }
 0x401   :  { %v273_v2 = vmul.f32 1.442695, %v270_v63 }
 0x403   :  { %1803 = vpow2.f32 %v273_v2 }
 0x405   :  { %v1802_v3 = vpop.eup %1801 }
 0x406   :  { %v275_v4 = vsel %vm167_vm2, %v1802_v3, 0.0 }
 0x407   :  { %276 = vadd.xlane.f32.xlu0 %v275_v4 }
 0x40d   :  { %v1804_v5 = vpop.eup %1803 }
 0x40e   :  { %v278_v6 = vsel %vm167_vm2, %v1804_v5, 0.0 }
 0x40f   :  { %279 = vadd.xlane.f32.xlu1 %v278_v6 }
 0x41d   :  { %287 = vrot.lane.b32.xlu0 %v1995_v39, %s1868_s2 }
 0x420   :  { %438 = vrot.lane.b32.xlu1 %v1997_v42, %s1869_s4 }
 0x421   :  { %386 = vrot.lane.b32.xlu0 %v1995_v39, %s1870_s20 }
 0x424   :  { %436 = vrot.lane.b32.xlu1 %v1997_v42, %s1870_s20 }
 0x494   :  { %v277_v7 = vpop.xlane.xlu0 %276 }
 0x495   :  { %1805 = vrcp.f32 %v277_v7 }
 0x498   :  { %v288_v9 = vpop.permute.xlu0 %287 }
 0x499   :  { %v294_v10 = vsel %vm292_vm3, %v288_v9, 0 }
 0x49a   :  { %1634 = vmatpush3.bf16.msra.mxu1 %v294_v10 }
 0x49b   :  { %1645 = vmatprep.subr.bf16.mxu1 %v1865_v15 }
 0x49c   :  { %v280_v11 = vpop.xlane.xlu1 %279  ;;  %v387_v21 = vpop.permute.xlu0 %386 }
 0x49d   :  { %1807 = vrcp.f32 %v280_v11  ;;  %v1527_v11 = vld [vmem:[%s2259_s5 + $0x4] sm:$0xf] }
 0x49f   :  { %v1806_v12 = vpop.eup %1805 }
 0x4a0   :  { %v283_v13 = vmul.f32 %v1806_v12, %v1802_v3  ;;  %v439_v19 = vpop.permute.xlu1 %438  ;;  %v385_v3 = vld [vmem:[%s2259_s5] sm:$0xf]  ;;  %v613_v12 = vsel %vm292_vm3, %v1527_v11, 0 }
 0x4a1   :  { %v444_v22 = vsel %vm167_vm2, %v439_v19, 0  ;;  %v660_v6 = vsel %vm292_vm3, %v385_v3, 0 }
 0x4a2   :  { %v285_v14 = vpack.c.bf16 %v283_v13, %v283_v13 }
 0x4a4   :  { %1636 = vmatmul.mubr.msk.bf16.vlgmr.msra.gmra.mrb[12].mxu1 %vm167_vm2, %v285_v14  ;;  %v437_v23 = vpop.permute.xlu1 %436 }
 0x4a5   :  { %1646 = vmatpush3.bf16.xpose.msra.mxu1 %v394_v16  ;;  %1647 = vmatprep.mubr.msk.bf16.mxu1 %vm1866_vm1, %v1865_v15 }
 0x4a6   :  { %1657 = vmatprep.subr.bf16.mxu1 %v1865_v15 }
 0x4a7   :  { %v1808_v17 = vpop.eup %1807 }
 0x4a8   :  { %v284_v18 = vmul.f32 %v1808_v17, %v1804_v5 }
 0x4aa   :  { %v286_v20 = vpack.c.bf16 %v284_v18, %v284_v18 }
 0x4ac   :  { %1642 = vmatmul.mubr.msk.bf16.vlgmr.msra.gmra.mrb[0].mxu0 %vm167_vm2, %v286_v20  ;;  %1648 = vmatmul.mubr.msk.bf16.vlgmr.msra.gmra.mrb[16].mxu1 %vm167_vm2, %v387_v21 }
 0x4ad   :  { %1652 = vmatpush3.bf16.xpose.msra.mxu0 %v444_v22  ;;  %1653 = vmatprep.mubr.msk.bf16.mxu0 %vm1866_vm1, %v1865_v15 }
 0x4ae   :  { %1663 = vmatprep.subr.bf16.mxu0 %v1865_v15  ;;  %1659 = vmatprep.mubr.msk.bf16.mxu1 %vm1866_vm1, %v1865_v15 }
 0x4b4   :  { %1654 = vmatmul.mubr.msk.bf16.vlgmr.msra.gmra.mrb[4].mxu0 %vm167_vm2, %v437_v23 }
 0x4b5   :  { %1665 = vmatprep.mubr.msk.bf16.mxu0 %vm1866_vm1, %v1865_v15 }
 0x577   :  { %v2043_v24 = vpop.f32.mrb[12].mxu1 }
 0x578   :  { %v1637_v25 = vpop.f32.mrb[13].mxu1 }
 0x579   :  { %v333_v26 = vpop.f32.mrb[14].mxu1 }
 0x57a   :  { %v1638_v27 = vpop.f32.mrb[15].mxu1 }
 0x57f   :  { %v2045_v28 = vpop.f32.mrb[0].mxu0  ;;  %v430_v29 = vpop.f32.mrb[16].mxu1 }
 0x580   :  { %v384_v30 = vpack.c.bf16 %v2045_v28, %v2043_v24  ;;  %v1643_v31 = vpop.f32.mrb[1].mxu0  ;;  %v1649_v32 = vpop.f32.mrb[17].mxu1  ;;  %v486_v33 = vsel %vm167_vm2, %v430_v29, -inf }
 0x581   :  { %v381_v34 = vpop.f32.mrb[2].mxu0  ;;  %487 = vmax.xlane.f32.xlu0 %v486_v33  ;;  %v433_v35 = vpop.f32.mrb[18].mxu1 }
 0x582   :  { %v1644_v36 = vpop.f32.mrb[3].mxu0  ;;  %v1650_v37 = vpop.f32.mrb[19].mxu1 }
 0x587   :  { %v480_v38 = vpop.f32.mrb[4].mxu0 }
 0x588   :  { %v1655_v40 = vpop.f32.mrb[5].mxu0  ;;  %v489_v41 = vsel %vm167_vm2, %v480_v38, -inf }
 0x589   :  { %490 = vmax.xlane.f32.xlu1 %v489_v41  ;;  %v483_v43 = vpop.f32.mrb[6].mxu0 }
 0x58a   :  { %v1656_v44 = vpop.f32.mrb[7].mxu0 }
 0x59a   :  { %558 = vrot.lane.b32.xlu1 %v1997_v42, %s1871_s21 }
 0x59e   :  { %705 = vrot.lane.b32.xlu1 %v1995_v39, %s1872_s22 }
 0x5a2   :  { %755 = vrot.lane.b32.xlu1 %v1997_v42, %s1872_s22 }
 0x5a6   :  { %753 = vrot.lane.b32.xlu1 %v1997_v42, %s1873_s23 }
 0x60e   :  { %v488_v45 = vpop.xlane.xlu0 %487 }
 0x60f   :  { %v492_v46 = vsub.f32 %v430_v29, %v488_v45 }
 0x611   :  { %v494_v47 = vmul.f32 1.442695, %v492_v46 }
 0x613   :  { %1809 = vpow2.f32 %v494_v47 }
 0x616   :  { %v491_v48 = vpop.xlane.xlu1 %490 }
 0x617   :  { %v493_v49 = vsub.f32 %v480_v38, %v491_v48 }
 0x619   :  { %v496_v50 = vmul.f32 1.442695, %v493_v49 }
 0x61a   :  { %v559_v51 = vpop.permute.xlu1 %558 }
 0x61b   :  { %1811 = vpow2.f32 %v496_v50  ;;  %v564_v52 = vsel %vm292_vm3, %v559_v51, 0 }
 0x61c   :  { %1664 = vmatpush3.bf16.msra.mxu0 %v564_v52 }
 0x61d   :  { %v1810_v53 = vpop.eup %1809  ;;  %1675 = vmatprep.subr.bf16.mxu0 %v1865_v15 }
 0x61e   :  { %v498_v54 = vsel %vm167_vm2, %v1810_v53, 0.0  ;;  %v706_v7 = vpop.permute.xlu1 %705 }
 0x61f   :  { %499 = vadd.xlane.f32.xlu0 %v498_v54  ;;  %v711_v22 = vsel %vm167_vm2, %v706_v7, 0 }
 0x622   :  { %v756_v8 = vpop.permute.xlu1 %755 }
 0x623   :  { %v761_v9 = vsel %vm167_vm2, %v756_v8, 0 }
 0x625   :  { %v1812_v55 = vpop.eup %1811 }
 0x626   :  { %v501_v56 = vsel %vm167_vm2, %v1812_v55, 0.0  ;;  %v754_v10 = vpop.permute.xlu1 %753 }
 0x627   :  { %502 = vadd.xlane.f32.xlu0 %v501_v56 }
 0x63d   :  { %510 = vrot.lane.b32.xlu0 %v1995_v39, %s1871_s21 }
 0x641   :  { %703 = vrot.lane.b32.xlu0 %v1995_v39, %s1873_s23 }
 0x6ac   :  { %v500_v57 = vpop.xlane.xlu0 %499 }
 0x6ad   :  { %1813 = vrcp.f32 %v500_v57 }
 0x6b4   :  { %v503_v58 = vpop.xlane.xlu0 %502 }
 0x6b5   :  { %1815 = vrcp.f32 %v503_v58 }
 0x6b7   :  { %v1814_v59 = vpop.eup %1813 }
 0x6b8   :  { %v506_v60 = vmul.f32 %v1814_v59, %v1810_v53  ;;  %v511_v61 = vpop.permute.xlu0 %510 }
 0x6b9   :  { %v516_v62 = vsel %vm292_vm3, %v511_v61, 0 }
 0x6ba   :  { %1658 = vmatpush3.bf16.msra.mxu1 %v516_v62  ;;  %v508_v63 = vpack.c.bf16 %v506_v60, %v506_v60 }
 0x6bb   :  { %1669 = vmatprep.subr.bf16.mxu1 %v1865_v15 }
 0x6bc   :  { %v704_v26 = vpop.permute.xlu0 %703 }
 0x6bd   :  { %1660 = vmatmul.mubr.msk.bf16.vlgmr.msra.gmra.mrb[20].mxu1 %vm167_vm2, %v508_v63 }
 0x6be   :  { %1671 = vmatprep.mubr.msk.bf16.mxu1 %vm1866_vm1, %v1865_v15  ;;  %1670 = vmatpush3.bf16.msra.mxu1 %v613_v12 }
 0x6bf   :  { %v1816_v2 = vpop.eup %1815  ;;  %1681 = vmatprep.subr.bf16.mxu1 %v1865_v15 }
 0x6c0   :  { %v507_v4 = vmul.f32 %v1816_v2, %v1812_v55 }
 0x6c2   :  { %v509_v5 = vpack.c.bf16 %v507_v4, %v507_v4 }
 0x6c4   :  { %1666 = vmatmul.mubr.msk.bf16.vlgmr.msra.gmra.mrb[8].mxu0 %vm167_vm2, %v509_v5 }
 0x6c5   :  { %1676 = vmatpush3.bf16.msra.mxu0 %v660_v6  ;;  %1677 = vmatprep.mubr.msk.bf16.mxu0 %vm1866_vm1, %v1865_v15 }
 0x6c6   :  { %1687 = vmatprep.subr.bf16.mxu0 %v1865_v15 }
 0x6cc   :  { %1678 = vmatmul.mubr.msk.bf16.vlgmr.msra.gmra.mrb[12].mxu0 %vm167_vm2, %v384_v30 }
 0x6cd   :  { %1689 = vmatprep.mubr.msk.bf16.mxu0 %vm1866_vm1, %v1865_v15 }
 0x6ce   :  { %1688 = vmatpush3.bf16.xpose.msra.mxu0 %v761_v9 }
 0x6cf   :  { %1699 = vmatprep.subr.bf16.mxu0 %v1865_v15 }
 0x6d5   :  { %1690 = vmatmul.mubr.msk.bf16.vlgmr.msra.gmra.mrb[16].mxu0 %vm167_vm2, %v754_v10 }
 0x6d6   :  { %1701 = vmatprep.mubr.msk.bf16.mxu0 %vm1866_vm1, %v1865_v15 }
 0x790   :  { %v552_v13 = vpop.f32.mrb[20].mxu1 }
 0x791   :  { %v1661_v14 = vpop.f32.mrb[21].mxu1 }
 0x792   :  { %v555_v16 = vpop.f32.mrb[22].mxu1  ;;  %v1534_v14 = vld [vmem:[%s2259_s5 + $0x8] sm:$0xf] }
 0x793   :  { %v1662_v17 = vpop.f32.mrb[23].mxu1  ;;  %v930_v16 = vsel %vm292_vm3, %v1534_v14, 0 }
 0x797   :  { %v600_v18 = vpop.f32.mrb[8].mxu0 }
 0x798   :  { %v606_v19 = vpack.c.bf16 %v600_v18, %v552_v13  ;;  %v1667_v20 = vpop.f32.mrb[9].mxu0 }
 0x799   :  { %v603_v21 = vpop.f32.mrb[10].mxu0 }
 0x79a   :  { %v1668_v23 = vpop.f32.mrb[11].mxu0  ;;  %1672 = vmatmul.mubr.msk.bf16.vlgmr.msra.gmra.mrb[24].mxu1 %vm167_vm2, %v606_v19 }
 0x79b   :  { %1682 = vmatpush3.bf16.xpose.msra.mxu1 %v711_v22  ;;  %1683 = vmatprep.mubr.msk.bf16.mxu1 %vm1866_vm1, %v1865_v15 }
 0x79c   :  { %1693 = vmatprep.subr.bf16.mxu1 %v1865_v15 }
 0x79f   :  { %v696_v24 = vpop.f32.mrb[12].mxu0 }
 0x7a0   :  { %v1679_v25 = vpop.f32.mrb[13].mxu0 }
 0x7a1   :  { %v699_v27 = vpop.f32.mrb[14].mxu0 }
 0x7a2   :  { %v1680_v28 = vpop.f32.mrb[15].mxu0  ;;  %1684 = vmatmul.mubr.msk.bf16.vlgmr.msra.gmra.mrb[28].mxu1 %vm167_vm2, %v704_v26 }
 0x7a3   :  { %1695 = vmatprep.mubr.msk.bf16.mxu1 %vm1866_vm1, %v1865_v15 }
 0x7a8   :  { %v797_v29 = vpop.f32.mrb[16].mxu0 }
 0x7a9   :  { %v1691_v30 = vpop.f32.mrb[17].mxu0  ;;  %v806_v31 = vsel %vm167_vm2, %v797_v29, -inf }
 0x7aa   :  { %807 = vmax.xlane.f32.xlu1 %v806_v31  ;;  %v800_v32 = vpop.f32.mrb[18].mxu0 }
 0x7ab   :  { %v1692_v33 = vpop.f32.mrb[19].mxu0 }
 0x7bb   :  { %875 = vrot.lane.b32.xlu1 %v1997_v42, %s1874_s28 }
 0x7bf   :  { %977 = vrot.lane.b32.xlu1 %v1995_v39, %s1875_s0 }
 0x7c3   :  { %1027 = vrot.lane.b32.xlu1 %v1997_v42, %s1875_s0 }
 0x7c7   :  { %1025 = vrot.lane.b32.xlu1 %v1997_v42, %s1876_s29 }
 0x837   :  { %v808_v34 = vpop.xlane.xlu1 %807 }
 0x838   :  { %v810_v37 = vsub.f32 %v797_v29, %v808_v34 }
 0x83a   :  { %v813_v38 = vmul.f32 1.442695, %v810_v37 }
 0x83b   :  { %v876_v35 = vpop.permute.xlu1 %875 }
 0x83c   :  { %v881_v36 = vsel %vm292_vm3, %v876_v35, 0  ;;  %1817 = vpow2.f32 %v813_v38 }
 0x83d   :  { %1700 = vmatpush3.bf16.msra.mxu0 %v881_v36 }
 0x83e   :  { %1711 = vmatprep.subr.bf16.mxu0 %v1865_v15 }
 0x83f   :  { %v978_v62 = vpop.permute.xlu1 %977 }
 0x840   :  { %v983_v2 = vsel %vm167_vm2, %v978_v62, 0 }
 0x843   :  { %v1028_v22 = vpop.permute.xlu1 %1027 }
 0x846   :  { %v1818_v50 = vpop.eup %1817 }
 0x847   :  { %v818_v53 = vsel %vm167_vm2, %v1818_v50, 0.0  ;;  %v1026_v29 = vpop.permute.xlu1 %1025 }
 0x86d   :  { %v649_v40 = vpop.f32.mrb[24].mxu1 }
 0x86e   :  { %v2107_v41 = vadd.f32 %v696_v24, %v649_v40  ;;  %v1673_v43 = vpop.f32.mrb[25].mxu1 }
 0x86f   :  { %v652_v44 = vpop.f32.mrb[26].mxu1 }
 0x870   :  { %v2109_v45 = vadd.f32 %v699_v27, %v652_v44  ;;  %v1674_v46 = vpop.f32.mrb[27].mxu1  ;;  %v1033_v27 = vsel %vm167_vm2, %v1028_v22, 0 }
 0x875   :  { %v747_v47 = vpop.f32.mrb[28].mxu1 }
 0x876   :  { %v1685_v48 = vpop.f32.mrb[29].mxu1  ;;  %v803_v49 = vsel %vm167_vm2, %v747_v47, -inf }
 0x877   :  { %804 = vmax.xlane.f32.xlu0 %v803_v49  ;;  %v750_v51 = vpop.f32.mrb[30].mxu1 }
 0x878   :  { %v1686_v52 = vpop.f32.mrb[31].mxu1 }
 0x87b   :  { %819 = vadd.xlane.f32.xlu0 %v818_v53 }
 0x904   :  { %v805_v54 = vpop.xlane.xlu0 %804 }
 0x905   :  { %v809_v55 = vsub.f32 %v747_v47, %v805_v54 }
 0x907   :  { %v811_v56 = vmul.f32 1.442695, %v809_v55 }
 0x908   :  { %v820_v57 = vpop.xlane.xlu0 %819 }
 0x909   :  { %1819 = vpow2.f32 %v811_v56 }
 0x90a   :  { %1821 = vrcp.f32 %v820_v57 }
 0x913   :  { %v1820_v58 = vpop.eup %1819 }
 0x914   :  { %v1822_v59 = vpop.eup %1821  ;;  %v815_v60 = vsel %vm167_vm2, %v1820_v58, 0.0 }
 0x915   :  { %v824_v61 = vmul.f32 %v1822_v59, %v1818_v50  ;;  %816 = vadd.xlane.f32.xlu0 %v815_v60 }
 0x917   :  { %v826_v63 = vpack.c.bf16 %v824_v61, %v824_v61 }
 0x919   :  { %1702 = vmatmul.mubr.msk.bf16.vlgmr.msra.gmra.mrb[20].mxu0 %vm167_vm2, %v826_v63  ;;  %v1540_v63 = vld [vmem:[%s2259_s5 + $0xc] sm:$0xf] }
 0x91a   :  { %1712 = vmatpush3.bf16.xpose.msra.mxu0 %v983_v2  ;;  %1713 = vmatprep.mubr.msk.bf16.mxu0 %vm1866_vm1, %v1865_v15  ;;  %v1202_v2 = vsel %vm292_vm3, %v1540_v63, 0 }
 0x91b   :  { %1723 = vmatprep.subr.bf16.mxu0 %v1865_v15 }
 0x92b   :  { %827 = vrot.lane.b32.xlu0 %v1995_v39, %s1874_s28 }
 0x92f   :  { %975 = vrot.lane.b32.xlu0 %v1995_v39, %s1876_s29 }
 0x9a2   :  { %v817_v3 = vpop.xlane.xlu0 %816 }
 0x9a3   :  { %1823 = vrcp.f32 %v817_v3 }
 0x9a6   :  { %v828_v4 = vpop.permute.xlu0 %827 }
 0x9a7   :  { %v833_v5 = vsel %vm292_vm3, %v828_v4, 0 }
 0x9a8   :  { %1694 = vmatpush3.bf16.msra.mxu1 %v833_v5 }
 0x9a9   :  { %1705 = vmatprep.subr.bf16.mxu1 %v1865_v15 }
 0x9aa   :  { %v976_v6 = vpop.permute.xlu0 %975 }
 0x9ab   :  { %1714 = vmatmul.mubr.msk.bf16.vlgmr.msra.gmra.mrb[24].mxu0 %vm167_vm2, %v976_v6 }
 0x9ac   :  { %1725 = vmatprep.mubr.msk.bf16.mxu0 %vm1866_vm1, %v1865_v15 }
 0x9ad   :  { %v1824_v7 = vpop.eup %1823 }
 0x9ae   :  { %v823_v8 = vmul.f32 %v1824_v7, %v1820_v58 }
 0x9b0   :  { %v825_v9 = vpack.c.bf16 %v823_v8, %v823_v8 }
 0x9b2   :  { %1696 = vmatmul.mubr.msk.bf16.vlgmr.msra.gmra.mrb[32].mxu1 %vm167_vm2, %v825_v9 }
 0x9b3   :  { %1707 = vmatprep.mubr.msk.bf16.mxu1 %vm1866_vm1, %v1865_v15  ;;  %1706 = vmatpush3.bf16.msra.mxu1 %v930_v16  ;;  %v1542_v16 = vld [vmem:[%s2260_s6] ss:$0 sm:$0xff]  ;;  %s1502_s6 = sshll.u32 %s1878_s17, 4  ;;  %s1503_s6 = int_to_ptr.vmem [resolvable:$true] %s1502_s6 }
 0x9b4   :  { %1717 = vmatprep.subr.bf16.mxu1 %v1865_v15  ;;  %s1841_s18 = scalar_lea.vmem %s1503_s6, 256  ;;  %p1846_p1 = scmp.lt.s32.totalorder %s1503_s6, %s1503_s6 }
 0x9b5   :  { %p1842_p0 = scmp.ne.s32.totalorder %s1503_s6, %s1841_s18  ;;  %p1847_p2 = scmp.lt.s32.totalorder %s1841_s18, %s1841_s18 }
 0x9b7   :  { %p1848_p3 = por %p1847_p2, %p1846_p1 }
 0x9b9   :  { %p1849_p4 = pnand %p1848_p3, %p1842_p0 }
 0x9ec   :  { %v917_v10 = vpop.f32.mrb[20].mxu0 }
 0x9ed   :  { %v1703_v11 = vpop.f32.mrb[21].mxu0 }
 0x9ee   :  { %v920_v12 = vpop.f32.mrb[22].mxu0 }
 0x9ef   :  { %v1704_v13 = vpop.f32.mrb[23].mxu0 }
 0xa7e   :  { %v1019_v17 = vpop.f32.mrb[24].mxu0 }
 0xa7f   :  { %v1715_v18 = vpop.f32.mrb[25].mxu0  ;;  %v1075_v19 = vsel %vm167_vm2, %v1019_v17, -inf }
 0xa80   :  { %1076 = vmax.xlane.f32.xlu0 %v1075_v19  ;;  %v1022_v20 = vpop.f32.mrb[26].mxu0 }
 0xa81   :  { %v1716_v21 = vpop.f32.mrb[27].mxu0 }
 0xa85   :  { %v869_v23 = vpop.f32.mrb[32].mxu1 }
 0xa86   :  { %v923_v24 = vpack.c.bf16 %v917_v10, %v869_v23  ;;  %v1697_v25 = vpop.f32.mrb[33].mxu1 }
 0xa87   :  { %v872_v26 = vpop.f32.mrb[34].mxu1 }
 0xa88   :  { %v1698_v28 = vpop.f32.mrb[35].mxu1  ;;  %1708 = vmatmul.mubr.msk.bf16.vlgmr.msra.gmra.mrb[36].mxu1 %vm167_vm2, %v923_v24 }
 0xa89   :  { %1718 = vmatpush3.bf16.xpose.msra.mxu1 %v1033_v27  ;;  %1719 = vmatprep.mubr.msk.bf16.mxu1 %vm1866_vm1, %v1865_v15 }
 0xa8a   :  { %1729 = vmatprep.subr.bf16.mxu1 %v1865_v15 }
 0xa90   :  { %1720 = vmatmul.mubr.msk.bf16.vlgmr.msra.gmra.mrb[40].mxu1 %vm167_vm2, %v1026_v29 }
 0xa91   :  { %1731 = vmatprep.mubr.msk.bf16.mxu1 %vm1866_vm1, %v1865_v15 }
 0xb0d   :  { %v1077_v30 = vpop.xlane.xlu0 %1076 }
 0xb0e   :  { %v1081_v31 = vsub.f32 %v1019_v17, %v1077_v30 }
 0xb10   :  { %v1083_v32 = vmul.f32 1.442695, %v1081_v31 }
 0xb12   :  { %1825 = vpow2.f32 %v1083_v32 }
 0xb1c   :  { %v1826_v33 = vpop.eup %1825 }
 0xb1d   :  { %v1087_v34 = vsel %vm167_vm2, %v1826_v33, 0.0 }
 0xb1e   :  { %1088 = vadd.xlane.f32.xlu0 %v1087_v34  ;;  %v1787_v34 = vld [vmem:[%s2263_s9] sm:$0xff]  }
 0xb5b   :  { %v966_v35 = vpop.f32.mrb[36].mxu1 }
 0xb5c   :  { %v973_v36 = vadd.f32 %v966_v35, %v2107_v41  ;;  %v1709_v37 = vpop.f32.mrb[37].mxu1  ;;  %v1788_v35 = vld [vmem:[%s2263_s9 + $0x8] sm:$0xff]  }
 0xb5d   :  { %v969_v38 = vpop.f32.mrb[38].mxu1  ;;  %v1790_v37 = vld [vmem:[%s2265_s11 + $0x8] sm:$0xff]  }
 0xb5e   :  { %v974_v40 = vadd.f32 %v969_v38, %v2109_v45  ;;  %v1710_v43 = vpop.f32.mrb[39].mxu1 }
 0xb63   :  { %v1069_v44 = vpop.f32.mrb[40].mxu1 }
 0xb64   :  { %v1721_v46 = vpop.f32.mrb[41].mxu1  ;;  %v1078_v47 = vsel %vm167_vm2, %v1069_v44, -inf }
 0xb65   :  { %1079 = vmax.xlane.f32.xlu1 %v1078_v47  ;;  %v1072_v48 = vpop.f32.mrb[42].mxu1 }
 0xb66   :  { %v1722_v49 = vpop.f32.mrb[43].mxu1 }
 0xb67   :  { %v1543_v49 = vld [vmem:[%s2261_s7] ss:$0 sm:$0xff] }
 0xb76   :  { %1147 = vrot.lane.b32.xlu1 %v1997_v42, %s1877_s3 }
 0xbab   :  { %v1089_v55 = vpop.xlane.xlu0 %1088 }
 0xbf2   :  { %v1080_v50 = vpop.xlane.xlu1 %1079 }
 0xbf3   :  { %v1082_v51 = vsub.f32 %v1069_v44, %v1080_v50 }
 0xbf5   :  { %v1085_v52 = vmul.f32 1.442695, %v1082_v51 }
 0xbf6   :  { %v1148_v53 = vpop.permute.xlu1 %1147 }
 0xbf7   :  { %1827 = vpow2.f32 %v1085_v52  ;;  %v1153_v41 = vsel %vm292_vm3, %v1148_v53, 0 }
 0xbf8   :  { %1730 = vmatpush3.bf16.msra.mxu1 %v1153_v41  ;;  %1829 = vrcp.f32 %v1089_v55  ;;  %v1544_v41 = vld [vmem:[%s2262_s8] ss:$0 sm:$0xff] }
 0xbf9   :  { %1741 = vmatprep.subr.bf16.mxu1 %v1865_v15 }
 0xc01   :  { %v1828_v45 = vpop.eup %1827 }
 0xc02   :  { %v1090_v54 = vsel %vm167_vm2, %v1828_v45, 0.0  ;;  %v1830_v56 = vpop.eup %1829 }
 0xc03   :  { %1091 = vadd.xlane.f32.xlu0 %v1090_v54  ;;  %v1095_v57 = vmul.f32 %v1830_v56, %v1826_v33 }
 0xc05   :  { %v1097_v60 = vpack.c.bf16 %v1095_v57, %v1095_v57  ;;  %v1792_v57 = vld [vmem:[%s2265_s11 + $0x18] sm:$0xff]  }
 0xc19   :  { %1099 = vrot.lane.b32.xlu0 %v1995_v39, %s1877_s3 }
 0xc90   :  { %v1092_v42 = vpop.xlane.xlu0 %1091 }
 0xc91   :  { %1831 = vrcp.f32 %v1092_v42  ;;  %v1791_v42 = vld [vmem:[%s2265_s11 + $0x10] sm:$0xff]  }
 0xc94   :  { %v1100_v58 = vpop.permute.xlu0 %1099 }
 0xc95   :  { %v1105_v59 = vsel %vm292_vm3, %v1100_v58, 0  ;;  %v1793_v58 = vld [vmem:[%s2265_s11 + $0x20] sm:$0xff]  }
 0xc96   :  { %1724 = vmatpush3.bf16.msra.mxu0 %v1105_v59  ;;  %v1794_v59 = vld [vmem:[%s2265_s11 + $0x28] sm:$0xff]  }
 0xc97   :  { %1735 = vmatprep.subr.bf16.mxu0 %v1865_v15 }
 0xc99   :  { %1726 = vmatmul.mubr.msk.bf16.vlgmr.msra.gmra.mrb[28].mxu0 %vm167_vm2, %v1097_v60  ;;  %v1795_v60 = vld [vmem:[%s2265_s11 + $0x30] sm:$0xff]  }
 0xc9a   :  { %1737 = vmatprep.mubr.msk.bf16.mxu0 %vm1866_vm1, %v1865_v15  ;;  %1736 = vmatpush3.bf16.msra.mxu0 %v1202_v2 }
 0xc9b   :  { %v1832_v61 = vpop.eup %1831  ;;  %1749 = vmatprep.subr.bf16.mxu0 %v1865_v15 }
 0xc9c   :  { %v1096_v39 = vmul.f32 %v1832_v61, %v1828_v45  ;;  %v1796_v61 = vld [vmem:[%s2265_s11 + $0x38] sm:$0xff]  }
 0xc9e   :  { %v1098_v62 = vpack.c.bf16 %v1096_v39, %v1096_v39  ;;  %v1545_v39 = vld [vmem:[%s2264_s10] ss:$0 sm:$0xff] }
 0xca0   :  { %1732 = vmatmul.mubr.msk.bf16.vlgmr.msra.gmra.mrb[44].mxu1 %vm167_vm2, %v1098_v62 }
 0xca1   :  { %1745 = vmatprep.mubr.msk.bf16.mxu1 %vm1866_vm1, %v1865_v15  ;;  %1742 = vmatpush3.bf16.msra.mxu1 %v1787_v34 }
 0xca2   :  { %1743 = vmatprep.subr.bf16.mxu1 %v1865_v15 }
 0xca5   :  { %1744 = vmatpush3.bf16.msra.mxu1 %v1788_v35 }
 0xd6c   :  { %v1141_v3 = vpop.f32.mrb[28].mxu0 }
 0xd6d   :  { %v1727_v4 = vpop.f32.mrb[29].mxu0 }
 0xd6e   :  { %v1144_v5 = vpop.f32.mrb[30].mxu0 }
 0xd6f   :  { %v1728_v6 = vpop.f32.mrb[31].mxu0 }
 0xd73   :  { %v1189_v7 = vpop.f32.mrb[44].mxu1 }
 0xd74   :  { %v1195_v8 = vpack.c.bf16 %v1189_v7, %v1141_v3  ;;  %v1733_v9 = vpop.f32.mrb[45].mxu1 }
 0xd75   :  { %v1192_v10 = vpop.f32.mrb[46].mxu1 }
 0xd76   :  { %v1734_v11 = vpop.f32.mrb[47].mxu1  ;;  %1738 = vmatmul.mubr.msk.bf16.vlgmr.msra.gmra.mrb[32].mxu0 %vm167_vm2, %v1195_v8 }
 0xd77   :  { %1765 = vmatprep.mubr.msk.bf16.mxu0 %vm1866_vm1, %v1865_v15 }
 0xe49   :  { %v1238_v12 = vpop.f32.mrb[32].mxu0 }
 0xe4a   :  { %v1245_v13 = vadd.f32 %v1238_v12, %v973_v36  ;;  %v1739_v14 = vpop.f32.mrb[33].mxu0  ;;  %v1789_v36 = vld [vmem:[%s2265_s11] sm:$0xff]  }
 0xe4b   :  { %v1241_v17 = vpop.f32.mrb[34].mxu0  ;;  %1750 = vmatpush3.bf16.msra.mxu0 %v1789_v36 }
 0xe4c   :  { %v1247_v18 = vadd.f32 %v1245_v13, %v1954_v0  ;;  %v1246_v19 = vadd.f32 %v1241_v17, %v974_v40  ;;  %v1740_v20 = vpop.f32.mrb[35].mxu0  ;;  %1751 = vmatprep.subr.bf16.mxu0 %v1865_v15  ;;  %v1549_v17 = vld [vmem:[%s2266_s12] ss:$0 sm:$0xff] }
 0xe4e   :  { %v2174_v21 = vadd.f32 %v1542_v16, %v1247_v18  ;;  %v1248_v22 = vadd.f32 %v1246_v19, %v1959_v1 }
 0xe4f   :  { %1752 = vmatpush3.bf16.msra.mxu0 %v1790_v37 }
 0xe50   :  { %v2177_v23 = vadd.f32 %v1542_v16, %v1248_v22  ;;  %v1260_v24 = vsel %vm50_vm0, %v2174_v21, 0.0  ;;  %1753 = vmatprep.subr.bf16.mxu0 %v1865_v15 }
 0xe51   :  { %1261 = vadd.xlane.f32.xlu1 %v1260_v24 }
 0xe52   :  { %v1263_v25 = vsel %vm50_vm0, %v2177_v23, 0.0 }
 0xe53   :  { %1264 = vadd.xlane.f32.xlu0 %v1263_v25  ;;  %1754 = vmatpush3.bf16.msra.mxu0 %v1791_v42 }
 0xe54   :  { %1755 = vmatprep.subr.bf16.mxu0 %v1865_v15 }
 0xe57   :  { %1756 = vmatpush3.bf16.msra.mxu0 %v1792_v57 }
 0xe58   :  { %1757 = vmatprep.subr.bf16.mxu0 %v1865_v15 }
 0xe5b   :  { %1758 = vmatpush3.bf16.msra.mxu0 %v1793_v58 }
 0xe5c   :  { %1759 = vmatprep.subr.bf16.mxu0 %v1865_v15 }
 0xe5f   :  { %1760 = vmatpush3.bf16.msra.mxu0 %v1794_v59 }
 0xe60   :  { %1761 = vmatprep.subr.bf16.mxu0 %v1865_v15 }
 0xe63   :  { %1762 = vmatpush3.bf16.msra.mxu0 %v1795_v60 }
 0xe64   :  { %1763 = vmatprep.subr.bf16.mxu0 %v1865_v15 }
 0xe67   :  { %1764 = vmatpush3.bf16.msra.mxu0 %v1796_v61 }
 0xede   :  { %v1262_v26 = vpop.xlane.xlu1 %1261 }
 0xedf   :  { %v1266_v27 = vmul.f32 0.03125, %v1262_v26 }
 0xee0   :  { %v1265_v28 = vpop.xlane.xlu0 %1264 }
 0xee1   :  { %v1268_v0 = vsub.f32 %v2174_v21, %v1266_v27  ;;  %v1267_v29 = vmul.f32 0.03125, %v1265_v28 }
 0xee3   :  { %v1269_v30 = vsub.f32 %v2177_v23, %v1267_v29  ;;  %v1270_v31 = vmul.f32 %v1268_v0, %v1268_v0 }
 0xee5   :  { %v1272_v1 = vsel %vm50_vm0, %v1270_v31, 0.0  ;;  %v1271_v32 = vmul.f32 %v1269_v30, %v1269_v30 }
 0xee6   :  { %1273 = vadd.xlane.f32.xlu0 %v1272_v1 }
 0xee7   :  { %v1275_v33 = vsel %vm50_vm0, %v1271_v32, 0.0 }
 0xee8   :  { %1276 = vadd.xlane.f32.xlu1 %v1275_v33 }
 0xf73   :  { %v1274_v38 = vpop.xlane.xlu0 %1273 }
 0xf74   :  { %v1278_v40 = vmul.f32 0.03125, %v1274_v38 }
 0xf75   :  { %v1277_v43 = vpop.xlane.xlu1 %1276 }
 0xf76   :  { %v1280_v44 = vadd.f32 1e-05, %v1278_v40  ;;  %v1279_v46 = vmul.f32 0.03125, %v1277_v43 }
 0xf78   :  { %1833 = vrsqrt.f32 %v1280_v44  ;;  %v1281_v47 = vadd.f32 1e-05, %v1279_v46 }
 0xf7a   :  { %1835 = vrsqrt.f32 %v1281_v47 }
 0xf82   :  { %v1834_v48 = vpop.eup %1833 }
 0xf83   :  { %v1284_v50 = vmul.f32 %v1834_v48, %v1268_v0 }
 0xf84   :  { %v1836_v51 = vpop.eup %1835 }
 0xf85   :  { %v1292_v52 = vmul.f32 %v1543_v49, %v1284_v50  ;;  %v1285_v53 = vmul.f32 %v1836_v51, %v1269_v30 }
 0xf87   :  { %v1293_v45 = vmul.f32 %v1543_v49, %v1285_v53  ;;  %v1300_v54 = vadd.f32 %v1544_v41, %v1292_v52 }
 0xf89   :  { %v1301_v55 = vadd.f32 %v1544_v41, %v1293_v45 }
 0xf8b   :  { %v1302_v56 = vpack.c.bf16 %v1301_v55, %v1300_v54 }
 0xf8d   :  { %1746 = vmatmul.mubr.msk.bf16.vlgmr.msra.gmra.mrb[48].mxu1 %vm50_vm0, %v1302_v56 }
0x1060   :  { %v1363_v62 = vpop.f32.mrb[48].mxu1 }
0x1061   :  { %v1364_v63 = vadd.f32 %v1545_v39, %v1363_v62  ;;  %v1747_v2 = vpop.f32.mrb[49].mxu1 }
0x1062   :  { %v1366_v3 = vpop.f32.mrb[50].mxu1 }
0x1063   :  { %v1372_v4 = vmul.f32 0.70710677, %v1364_v63  ;;  %v1367_v5 = vadd.f32 %v1545_v39, %v1366_v3  ;;  %v1748_v6 = vpop.f32.mrb[51].mxu1  ;;  %v1370_v10 = vmul.f32 0.5, %v1364_v63 }
0x1065   :  { %1837 = verf.f32 %v1372_v4  ;;  %v1373_v7 = vmul.f32 0.70710677, %v1367_v5  ;;  %v1371_v11 = vmul.f32 0.5, %v1367_v5 }
0x1067   :  { %1839 = verf.f32 %v1373_v7 }
0x106f   :  { %v1838_v15 = vpop.eup %1837 }
0x1070   :  { %v1376_v8 = vadd.f32 1.0, %v1838_v15 }
0x1071   :  { %v1840_v9 = vpop.eup %1839 }
0x1072   :  { %v1377_v12 = vadd.f32 1.0, %v1840_v9  ;;  %v1378_v13 = vmul.f32 %v1376_v8, %v1370_v10 }
0x1074   :  { %v1379_v14 = vmul.f32 %v1377_v12, %v1371_v11 }
0x1076   :  { %v1380_v16 = vpack.c.bf16 %v1379_v14, %v1378_v13 }
0x1078   :  { %1766 = vmatmul.mubr.bf16.vlgmr.msra.gmra.mrb[36].mxu0 %v1380_v16 }
0x114b   :  { %v1486_v18 = vpop.f32.mrb[36].mxu0 }
0x114c   :  { %v1487_v19 = vadd.f32 %v1549_v17, %v1486_v18  ;;  %v1767_v20 = vpop.f32.mrb[37].mxu0 }
0x114d   :  { %v1489_v22 = vpop.f32.mrb[38].mxu0 }
0x114e   :  { %v1493_v24 = vadd.f32 %v1487_v19, %v2174_v21  ;;  %v1490_v25 = vadd.f32 %v1549_v17, %v1489_v22  ;;  %v1768_v26 = vpop.f32.mrb[39].mxu0 }
0x1150   :  { %1495 = vst.msk [vmem:[#allocation2] sm:$0xff] %vm50_vm0, %v1493_v24  ;;  %v1494_v27 = vadd.f32 %v1490_v25, %v2177_v23 }
0x1152   :  { %1496 = vst.msk [vmem:[#allocation2 + $0x8] sm:$0xff] %vm50_vm0, %v1494_v27 }
0x1153   :  { %1852 = shalt.err (!%p1849_p4)
}
0x1154   :  { %s1853_s1 = scalar_lea.hbm %s2267_s13, 256 }
0x1155   :  { %p1854_p5 = scmp.ne.s32.totalorder %s2267_s13, %s1853_s1  ;;  %p1857_p6 = scmp.lt.u32.totalorder %s1853_s1, %s2267_s13 }
0x1157   :  { %p1859_p7 = pnand %p1857_p6, %p1854_p5 }
0x1159   :  { %1862 = shalt.err (!%p1859_p7)
}
0x115a   :  { %s1879_s9 = smov 128   ;;  %s1880_s22 = smov 8  }
0x115b   :  { %1508 = dma.vmem_to_hbm [thread:$0]  %s1503_s6, 256, %s2267_s13, [#allocation3], %s1879_s9, %s1879_s9, %s1880_s22  }
0x115c   :  { %1863 = dma.done.wait [#allocation3], 256  }
0x115d   :  { %1864 = vsyncadd [#allocation3], 4294967040 }
0x115e   :  { %1512 = vsyncpa [#allocation3], 1 }

</bundles_post_ra>
